<compile_context>
chip_gen: v5e
topology: v5e:2x2
jax: 0.10.0
libtpu: 0.0.40
codegen_flags: <defaults>
</compile_context>

<pallas_src>
import jax
import jax.numpy as jnp
from jax.experimental import pallas as pl
from jax.experimental.pallas import tpu as pltpu

EPS_NORM = 1e-12   # eps of torch.nn.functional.normalize
EPS_COS = 1e-3     # eps of CossimMatrix.forward


def proto_kernel(f_ref, bs_ref, cos_ref, sim_ref, arg_ref, maxfs_ref):
    TB, N, D = f_ref.shape
    P = bs_ref.shape[1]                          # padded prototype count (multiple of 128)

    f2 = f_ref[...].reshape(TB * N, D)           # fold batch into matmul rows (leading-dim reshape: free)

    # ---- F.normalize(f, p=2, dim=-1): per-row scalars on (TB*N, 1) vectors followed
    #      by broadcast multiplies (no (TB*N, D)-wide divides); the CossimMatrix row
    #      norm ||fn|| == min(||f||/eps, 1) reuses the same sum-of-squares reduce.
    norm = jnp.sqrt(jnp.sum(f2 * f2, axis=1, keepdims=True))        # (TB*N, 1)
    inv_norm = 1.0 / jnp.maximum(norm, EPS_NORM)                     # per-row, cheap
    na = jnp.minimum(norm * (1.0 / EPS_NORM), 1.0) + EPS_COS         # = ||fn|| + eps_cos
    fn2 = f2 * inv_norm                                              # normalized features
    a_s = f2 * (inv_norm / na)                                       # CossimMatrix lhs rows

    # ---- CossimMatrix: prototypes are pre-normalized & pre-scaled in the wrapper.
    #      precision=HIGHEST keeps exact f32 MXU numerics so the exact-equality
    #      argmax below matches an f32 reference (perf-review correctness concern).
    cos2 = jnp.dot(a_s, bs_ref[...],
                   precision=jax.lax.Precision.HIGHEST,
                   preferred_element_type=jnp.float32)               # (TB*N, P)
    cos3 = cos2.reshape(TB, N, P)
    cos_ref[...] = cos3                                              # lane-dense (N, P) store

    # ---- dist.max(2): max + first-occurrence argmax over the token (sublane) axis.
    sim = jnp.max(cos3, axis=1, keepdims=True)                       # (TB, 1, P)
    tok = jax.lax.broadcasted_iota(jnp.int32, cos3.shape, 1)         # (TB, N, P)
    arg = jnp.min(jnp.where(cos3 == sim, tok, N),
                  axis=1, keepdims=True)                             # (TB, 1, P) int32
    sim_ref[...] = sim
    arg_ref[...] = arg
    # TODO(synk): like torch argmax this assumes finite cos values; a NaN row would
    # make the equality miss every token and silently zero the gathered feature.

    # ---- maxfs = fn[b, argmaxdist]: ONE batched canonical MXU contraction over the
    #      token axis ('bpn,bnd->bpd', the standard batched-matmul orientation),
    #      replacing the per-sample Python loop and the fn3[b].T transposes.  The
    #      single batched XLU transpose of the 0/1 mask is cheap filler under the DMA.
    onehot_t = jnp.swapaxes((tok == arg).astype(jnp.float32), 1, 2)  # (TB, P, N)
    fn3 = fn2.reshape(TB, N, D)
    maxfs_ref[...] = jnp.einsum('bpn,bnd->bpd', onehot_t, fn3,
                                preferred_element_type=jnp.float32)  # (TB, P, D) module orientation


def _per_step_vmem_bytes(N, D, P_pad):
    """Rough per-sample (TB == 1) VMEM bytes for one grid step: double-buffered
    input/output blocks plus the main in-kernel intermediates."""
    io = (N * D + N * P_pad + P_pad * D + 2 * P_pad) * 4      # f, cos, maxfs, sim+arg
    tmp = (4 * N * P_pad + 3 * N * D) * 4                     # cos3/tok/onehot(+T), fn/a_s
    return 2 * io + tmp


def _pick_batch_tile(B, per_sample_bytes, vmem_budget_bytes=10 << 20, target_steps=8):
    """Budgeted batch tile (perf review): keep the per-step footprint well under the
    scoped VMEM limit on every generation (v5e 16 MiB default scope, v7x 64 MiB
    physical) and keep B // TB >= min(target_steps, B) grid steps so the software
    pipeline has a steady state and both v7x TensorCores stay busy.  Among the
    surviving divisors prefer TB % 4 == 0 (TB*N a multiple of the 256-row MXU tile
    when N == 64) with an even number of grid steps (megacore), depth permitting."""
    divisors = [d for d in range(1, B + 1) if B % d == 0]
    fit = [d for d in divisors if d * per_sample_bytes <= vmem_budget_bytes] or [1]
    want = min(target_steps, B)
    deep = [d for d in fit if B // d >= want] or fit
    pref = [d for d in deep if d % 4 == 0 and (B // d) % 2 == 0]
    return max(pref) if pref else max(deep)


def proto_layer_forward(x, prototype, weight, weight_e,
                        num_classes, num_proto, fmap_size=(8, 8)):
    B, C, H, W = x.shape
    oh, ow = fmap_size
    # TODO(synk): only the divisible adaptive_avg_pool2d case (H % oh == 0, W % ow == 0) is handled.
    kh, kw = H // oh, W // ow
    N, D = oh * ow, C
    P = num_classes * num_proto
    P_pad = ((P + 127) // 128) * 128          # lane-dense prototype axis

    # ---- adaptive_avg_pool2d + flatten + mT in the wrapper (perf review): pooling
    # first shrinks the transposed/copied bytes and the kernel's input DMA by kh*kw
    # versus shipping raw NCHW pixels; input stays f32 so numerics match the module.
    xf = x.astype(jnp.float32)
    pooled = xf.reshape(B, C, oh, kh, ow, kw).mean(axis=(3, 5))         # (B, C, oh, ow)
    f_in = pooled.reshape(B, C, N).transpose(0, 2, 1)                   # (B, N, D) token-major

    # ---- batch-invariant parameter preprocessing (hoisted out of the kernel):
    #   b_s = F.normalize(prototype, dim=-2) / (||normalized|| + eps_cos), padded to P_pad.
    proto2d = prototype.reshape(D, P).astype(jnp.float32)
    pnorm = jnp.sqrt(jnp.sum(proto2d * proto2d, axis=0, keepdims=True))  # (1, P)
    pn = proto2d / jnp.maximum(pnorm, EPS_NORM)
    nb = jnp.minimum(pnorm / EPS_NORM, 1.0) + EPS_COS                    # = ||pn|| + eps_cos
    b_s = jnp.pad(pn / nb, ((0, 0), (0, P_pad - P)))                     # (D, P_pad)

    TB = _pick_batch_tile(B, _per_step_vmem_bytes(N, D, P_pad))

    out_shapes = (
        jax.ShapeDtypeStruct((B, N, P_pad), jnp.float32),   # cos (token-major, lane-dense P)
        jax.ShapeDtypeStruct((B, 1, P_pad), jnp.float32),   # sim
        jax.ShapeDtypeStruct((B, 1, P_pad), jnp.int32),     # argmaxdist (int32; torch gives int64)
        jax.ShapeDtypeStruct((B, P_pad, D), jnp.float32),   # maxfs (already in module orientation)
    )

    grid_spec = pltpu.PrefetchScalarGridSpec(
        num_scalar_prefetch=0,
        grid=(B // TB,),
        in_specs=[
            pl.BlockSpec((TB, N, D), lambda g: (g, 0, 0)),
            pl.BlockSpec((D, P_pad), lambda g: (0, 0)),
        ],
        out_specs=[
            pl.BlockSpec((TB, N, P_pad), lambda g: (g, 0, 0)),
            pl.BlockSpec((TB, 1, P_pad), lambda g: (g, 0, 0)),
            pl.BlockSpec((TB, 1, P_pad), lambda g: (g, 0, 0)),
            pl.BlockSpec((TB, P_pad, D), lambda g: (g, 0, 0)),
        ],
    )

    cos_np_, sim_, arg_, maxfs_ = pl.pallas_call(
        proto_kernel,
        out_shape=out_shapes,
        grid_spec=grid_spec,
        compiler_params=pltpu.CompilerParams(
            dimension_semantics=("parallel",),
            # explicit scope: above v5e's 16 MiB default, below v7x's 64 MiB physical
            vmem_limit_bytes=32 * 1024 * 1024,
        ),
    )(f_in, b_s)

    # ---- tiny fused XLA epilogue: drop padded prototype columns, restore the
    # module's (B, P, ...) orientations, derive cosdist = 1 - cosvalue, apply the
    # batch-invariant class weights, and recompute the normalized-feature output
    # (removed from the kernel — its D=32-lane store was a masked-vst stream).
    # TODO(synk): downstream consumers could read the kernel-native (B, N, P) cos
    # layout directly and skip the transpose / 1-cos passes entirely.
    cos_pn = jnp.transpose(cos_np_[:, :, :P], (0, 2, 1))                 # (B, P, N)
    maxfs = maxfs_[:, :P, :]                                             # (B, P, D)
    sim_u = sim_[:, 0, :P].reshape(B, num_classes, num_proto)
    contrib = sim_u * weight * jax.nn.sigmoid(weight_e)
    fnorm = jnp.sqrt(jnp.sum(f_in * f_in, axis=-1, keepdims=True))
    fn = f_in / jnp.maximum(fnorm, EPS_NORM)

    return {
        'cosvalue': cos_pn.reshape(B, num_classes, num_proto, N),
        'cosdist': (1.0 - cos_pn).reshape(B, num_classes, num_proto, N),
        'maxfs': maxfs.reshape(B, num_classes, num_proto, D),
        'f': fn,
        'sim': sim_u,
        'pdl_out': contrib.sum(-1),
        'contrib': contrib,
        'argmaxdist': arg_[:, 0, :P],
    }


def proto_layer_forward_ref(x, prototype, weight, weight_e,
                            num_classes, num_proto, fmap_size=(8, 8)):
    """Pure-JAX reference of ProtoLayer.forward."""
    B, C, H, W = x.shape
    oh, ow = fmap_size
    pooled = x.reshape(B, C, oh, H // oh, ow, W // ow).mean(axis=(3, 5))
    f = pooled.reshape(B, C, oh * ow).transpose(0, 2, 1)               # (B, N, D)
    fn = f / jnp.maximum(jnp.linalg.norm(f, axis=-1, keepdims=True), EPS_NORM)
    p = prototype / jnp.maximum(jnp.linalg.norm(prototype, axis=-2, keepdims=True), EPS_NORM)
    na = jnp.linalg.norm(fn, axis=-1, keepdims=True) + EPS_COS
    nb = jnp.linalg.norm(p, axis=-2, keepdims=True) + EPS_COS
    P = num_classes * num_proto
    b_s = jnp.broadcast_to(p / nb, (B, C, P))
    cos = jnp.einsum('bnd,bdp->bnp', fn / na, b_s,
                     precision=jax.lax.Precision.HIGHEST)
    cos_t = cos.transpose(0, 2, 1)                                     # (B, P, N)
    sim = cos_t.max(-1)
    arg = jnp.argmax(cos_t, axis=-1)
    maxfs = jnp.take_along_axis(fn, arg[:, :, None], axis=1)           # (B, P, D)
    sim_u = sim.reshape(B, num_classes, num_proto)
    contrib = sim_u * weight * jax.nn.sigmoid(weight_e)
    out = contrib.sum(-1)
    return {
        'cosvalue': cos_t.reshape(B, num_classes, num_proto, oh * ow),
        'cosdist': (1.0 - cos_t).reshape(B, num_classes, num_proto, oh * ow),
        'maxfs': maxfs.reshape(B, num_classes, num_proto, C),
        'f': fn,
        'sim': sim_u,
        'pdl_out': out,
        'contrib': contrib,
        'argmaxdist': arg.astype(jnp.int32),
    }


if __name__ == "__main__":
    # Small shapes consistent with the module: batch=2, channels(num_features)=32,
    # spatial=16x16, fmap_size=(8,8) -> N=64 tokens, num_classes=4, num_proto=10 -> P=40.
    B, C, H, W = 2, 32, 16, 16
    num_classes, num_proto = 4, 10
    fmap_size = (8, 8)

    key = jax.random.PRNGKey(0)
    kx, kp = jax.random.split(key)
    x = jax.random.normal(kx, (B, C, H, W), dtype=jnp.float32)

    # Deterministic parameter init mirroring ProtoLayer.__init__:
    prototype = (C ** -0.5) * jax.random.normal(kp, (1, C, num_classes * num_proto), jnp.float32)
    weight = jnp.ones((num_classes, num_proto), jnp.float32)
    weight_e = 10.0 * jnp.ones((num_classes, num_proto), jnp.float32)

    fwd = jax.jit(proto_layer_forward, static_argnums=(4, 5, 6))
    res = fwd(x, prototype, weight, weight_e, num_classes, num_proto, fmap_size)
    jax.block_until_ready(res)

    ref = proto_layer_forward_ref(x, prototype, weight, weight_e,
                                  num_classes, num_proto, fmap_size)

    for k in ('cosvalue', 'cosdist', 'f', 'sim', 'maxfs', 'contrib', 'pdl_out'):
        assert jnp.allclose(res[k], ref[k], atol=1e-4, rtol=1e-4), k
    assert jnp.array_equal(res['argmaxdist'], ref['argmaxdist'])

    print("KERNEL_OK")
</pallas_src>

<mosaic_0001>
module attributes {stable_mosaic.version = 11 : i64} {
  func.func @proto_kernel(%arg0: i32, %arg1: memref<1x64x32xf32, #tpu.memory_space<vmem>>, %arg2: memref<32x128xf32, #tpu.memory_space<vmem>>, %arg3: memref<1x64x128xf32, #tpu.memory_space<vmem>>, %arg4: memref<1x1x128xf32, #tpu.memory_space<vmem>>, %arg5: memref<1x1x128xi32, #tpu.memory_space<vmem>>, %arg6: memref<1x128x32xf32, #tpu.memory_space<vmem>>) attributes {dimension_semantics = [#tpu.dimension_semantics<parallel>], iteration_bounds = array<i64: 2>, scalar_prefetch = 0 : i64, scratch_operands = 0 : i64, tpu.core_type = #tpu.core_type<tc>, window_params = [{transform_indices = @transform_0, window_bounds = array<i64: 1, 64, 32>}, {pipeline_mode = #tpu.pipeline_mode<synchronous>, transform_indices = @transform_1, window_bounds = array<i64: 32, 128>}, {transform_indices = @transform_2, window_bounds = array<i64: 1, 64, 128>}, {transform_indices = @transform_3, window_bounds = array<i64: 1, 1, 128>}, {transform_indices = @transform_4, window_bounds = array<i64: 1, 1, 128>}, {transform_indices = @transform_5, window_bounds = array<i64: 1, 128, 32>}]} {
    %c0 = arith.constant 0 : index
    %c0_0 = arith.constant 0 : index
    %c0_1 = arith.constant 0 : index
    %0 = vector.load %arg1[%c0, %c0_0, %c0_1] : memref<1x64x32xf32, #tpu.memory_space<vmem>>, vector<1x64x32xf32>
    %1 = vector.shape_cast %0 : vector<1x64x32xf32> to vector<64x32xf32>
    %2 = arith.mulf %1, %1 : vector<64x32xf32>
    %cst = arith.constant dense<0.000000e+00> : vector<64xf32>
    %3 = vector.multi_reduction <add>, %2, %cst [1] : vector<64x32xf32> to vector<64xf32>
    %4 = vector.shape_cast %3 : vector<64xf32> to vector<64x1xf32>
    %5 = math.sqrt %4 : vector<64x1xf32>
    %cst_2 = arith.constant 9.99999996E-13 : f32
    %6 = vector.broadcast %cst_2 : f32 to vector<64x1xf32>
    %7 = arith.maximumf %5, %6 : vector<64x1xf32>
    %cst_3 = arith.constant 1.000000e+00 : f32
    %8 = vector.broadcast %cst_3 : f32 to vector<64x1xf32>
    %9 = arith.divf %8, %7 : vector<64x1xf32>
    %cst_4 = arith.constant 9.99999995E+11 : f32
    %10 = vector.broadcast %cst_4 : f32 to vector<64x1xf32>
    %11 = arith.mulf %5, %10 : vector<64x1xf32>
    %cst_5 = arith.constant 1.000000e+00 : f32
    %12 = vector.broadcast %cst_5 : f32 to vector<64x1xf32>
    %13 = arith.minimumf %11, %12 : vector<64x1xf32>
    %cst_6 = arith.constant 1.000000e-03 : f32
    %14 = vector.broadcast %cst_6 : f32 to vector<64x1xf32>
    %15 = arith.addf %13, %14 : vector<64x1xf32>
    %16 = vector.broadcast %9 : vector<64x1xf32> to vector<64x32xf32>
    %17 = arith.mulf %1, %16 : vector<64x32xf32>
    %18 = arith.divf %9, %15 : vector<64x1xf32>
    %19 = vector.broadcast %18 : vector<64x1xf32> to vector<64x32xf32>
    %20 = arith.mulf %1, %19 : vector<64x32xf32>
    %c0_7 = arith.constant 0 : index
    %c0_8 = arith.constant 0 : index
    %21 = vector.load %arg2[%c0_7, %c0_8] : memref<32x128xf32, #tpu.memory_space<vmem>>, vector<32x128xf32>
    %cst_9 = arith.constant dense<0.000000e+00> : vector<64x128xf32>
    %22 = tpu.matmul %20, %21, %cst_9 {dimension_numbers = #tpu.dot_dimension_numbers<[1], [0], [0], [1], [0, 0, 1, 1], [], []>, precision = #tpu.contract_precision<fp32>} : vector<64x32xf32>, vector<32x128xf32>, vector<64x128xf32> -> vector<64x128xf32>
    %23 = vector.shape_cast %22 : vector<64x128xf32> to vector<1x64x128xf32>
    %c0_10 = arith.constant 0 : index
    %c0_11 = arith.constant 0 : index
    %c0_12 = arith.constant 0 : index
    %24 = vector.load %arg3[%c0_10, %c0_11, %c0_12] : memref<1x64x128xf32, #tpu.memory_space<vmem>>, vector<1x64x128xf32>
    tpu.vector_store %arg3[%c0_10, %c0_11, %c0_12], %23 {strides = array<i32>} : memref<1x64x128xf32, #tpu.memory_space<vmem>>, vector<1x64x128xf32>,
    %cst_13 = arith.constant dense<0xFF800000> : vector<1x128xf32>
    %25 = vector.multi_reduction <maximumf>, %23, %cst_13 [1] : vector<1x64x128xf32> to vector<1x128xf32>
    %26 = vector.shape_cast %25 : vector<1x128xf32> to vector<1x1x128xf32>
    %27 = tpu.iota {dimensions = array<i32: 1>} : vector<1x64x128xi32>
    %28 = vector.broadcast %26 : vector<1x1x128xf32> to vector<1x64x128xf32>
    %29 = arith.cmpf oeq, %23, %28 : vector<1x64x128xf32>
    %c64_i32 = arith.constant 64 : i32
    %30 = vector.broadcast %c64_i32 : i32 to vector<1x64x128xi32>
    %31 = arith.select %29, %27, %30 : vector<1x64x128xi1>, vector<1x64x128xi32>
    %cst_14 = arith.constant dense<2147483647> : vector<1x128xi32>
    %32 = vector.multi_reduction <minsi>, %31, %cst_14 [1] : vector<1x64x128xi32> to vector<1x128xi32>
    %33 = vector.shape_cast %32 : vector<1x128xi32> to vector<1x1x128xi32>
    %c0_15 = arith.constant 0 : index
    %c0_16 = arith.constant 0 : index
    %c0_17 = arith.constant 0 : index
    %34 = vector.load %arg4[%c0_15, %c0_16, %c0_17] : memref<1x1x128xf32, #tpu.memory_space<vmem>>, vector<1x1x128xf32>
    tpu.vector_store %arg4[%c0_15, %c0_16, %c0_17], %26 {strides = array<i32>} : memref<1x1x128xf32, #tpu.memory_space<vmem>>, vector<1x1x128xf32>,
    %c0_18 = arith.constant 0 : index
    %c0_19 = arith.constant 0 : index
    %c0_20 = arith.constant 0 : index
    %35 = vector.load %arg5[%c0_18, %c0_19, %c0_20] : memref<1x1x128xi32, #tpu.memory_space<vmem>>, vector<1x1x128xi32>
    tpu.vector_store %arg5[%c0_18, %c0_19, %c0_20], %33 {strides = array<i32>} : memref<1x1x128xi32, #tpu.memory_space<vmem>>, vector<1x1x128xi32>,
    %36 = vector.broadcast %33 : vector<1x1x128xi32> to vector<1x64x128xi32>
    %37 = arith.cmpi eq, %27, %36 : vector<1x64x128xi32>
    %38 = arith.extui %37 : vector<1x64x128xi1> to vector<1x64x128xi32>
    %39 = arith.sitofp %38 : vector<1x64x128xi32> to vector<1x64x128xf32>
    %40 = tpu.transpose %39, [0, 2, 1] : vector<1x64x128xf32> -> vector<1x128x64xf32>
    %41 = vector.shape_cast %17 : vector<64x32xf32> to vector<1x64x32xf32>
    "tpu.trace_start"() <{level = 10 : i32, message = "bpn,bnd->bpd"}> : () -> ()
    %cst_21 = arith.constant dense<0.000000e+00> : vector<1x128x32xf32>
    %42 = tpu.matmul %40, %41, %cst_21 {dimension_numbers = #tpu.dot_dimension_numbers<[2], [1], [1], [2], [0, 0, 0, 1, 1, 2], [0], [0]>} : vector<1x128x64xf32>, vector<1x64x32xf32>, vector<1x128x32xf32> -> vector<1x128x32xf32>
    "tpu.trace_stop"() : () -> ()
    %c0_22 = arith.constant 0 : index
    %c0_23 = arith.constant 0 : index
    %c0_24 = arith.constant 0 : index
    %43 = vector.load %arg6[%c0_22, %c0_23, %c0_24] : memref<1x128x32xf32, #tpu.memory_space<vmem>>, vector<1x128x32xf32>
    tpu.vector_store %arg6[%c0_22, %c0_23, %c0_24], %42 {strides = array<i32>} : memref<1x128x32xf32, #tpu.memory_space<vmem>>, vector<1x128x32xf32>,
    return
  }
  func.func @transform_0(%arg0: i32) -> (i32, i32, i32) {
    %c0_i32 = arith.constant 0 : i32
    %c0_i32_0 = arith.constant 0 : i32
    %c0_i32_1 = arith.constant 0 : i32
    return %arg0, %c0_i32, %c0_i32_0 : i32, i32, i32
  }
  func.func @transform_1(%arg0: i32) -> (i32, i32) {
    %c0_i32 = arith.constant 0 : i32
    %c0_i32_0 = arith.constant 0 : i32
    %c0_i32_1 = arith.constant 0 : i32
    return %c0_i32, %c0_i32_0 : i32, i32
  }
  func.func @transform_2(%arg0: i32) -> (i32, i32, i32) {
    %c0_i32 = arith.constant 0 : i32
    %c0_i32_0 = arith.constant 0 : i32
    %c0_i32_1 = arith.constant 0 : i32
    return %arg0, %c0_i32, %c0_i32_0 : i32, i32, i32
  }
  func.func @transform_3(%arg0: i32) -> (i32, i32, i32) {
    %c0_i32 = arith.constant 0 : i32
    %c0_i32_0 = arith.constant 0 : i32
    %c0_i32_1 = arith.constant 0 : i32
    return %arg0, %c0_i32, %c0_i32_0 : i32, i32, i32
  }
  func.func @transform_4(%arg0: i32) -> (i32, i32, i32) {
    %c0_i32 = arith.constant 0 : i32
    %c0_i32_0 = arith.constant 0 : i32
    %c0_i32_1 = arith.constant 0 : i32
    return %arg0, %c0_i32, %c0_i32_0 : i32, i32, i32
  }
  func.func @transform_5(%arg0: i32) -> (i32, i32, i32) {
    %c0_i32 = arith.constant 0 : i32
    %c0_i32_0 = arith.constant 0 : i32
    %c0_i32_1 = arith.constant 0 : i32
    return %arg0, %c0_i32, %c0_i32_0 : i32, i32, i32
  }
}

</mosaic_0001>

<bundles_post_ra>
// kernel: squeeze.2
= control target key start
LH: loop header
LB: loop body
LE: loop exit
PB: predicated region body
PF: predicated region fallthrough
CT: control target
= control target key end

     0   :  { %s44_s8 = smov 98   ;;  %s45_s9 = smov 108   ;;  %vm7_vm0 = vcmask 80896   ;;  %s65_s0 = inlined_call_operand.vmem [shape: f32[2,40], index: 0, kind: input, shape index: {}]   ;;  %s66_s1 = inlined_call_operand.vmem [shape: f32[2,4,10], index: 1, kind: output, shape index: {}]  }
   0x1   :  { %v4_v0 = vld [vmem:[%s65_s0] sm:$0x3]  ;;  %s43_s0 = smov 118  }
   0x2   :  { %5 = vst [vmem:[#allocation1] sm:$0x3] %v4_v0 }
   0x9   :  { %v9_v1 = vld [vmem:[#allocation1] sm:$0x3]  }
   0xa   :  { %v21_v2 = vld [vmem:[#allocation1] sm:$0x3]   ;;  %10 = vrot.lane.b32.xlu0 %v9_v1, %s43_s0 }
   0xb   :  { %22 = vrot.lane.b32.xlu1 %v21_v2, %s44_s8  ;;  %v15_v3 = vld [vmem:[#allocation1] sm:$0x3]  }
   0xc   :  { %v6_v4 = vld [vmem:[#allocation1] sm:$0x3]  }
   0xd   :  { %8 = vst.msk [vmem:[#allocation0] ss:$8 sm:$0x3] %vm7_vm0, %v6_v4  }
  0x12   :  { %16 = vrot.lane.b32.xlu0 %v15_v3, %s45_s9 }
  0x7c   :  { %v11_v5 = vpop.permute.xlu0 %10  }
  0x7d   :  { %v23_v6 = vpop.permute.xlu1 %22   ;;  %14 = vst.msk [vmem:[#allocation0 + $0x1] ss:$8 sm:$0x3] %vm7_vm0, %v11_v5  }
  0x7e   :  { %26 = vst.msk [vmem:[#allocation0 + $0x3] ss:$8 sm:$0x3] %vm7_vm0, %v23_v6  }
  0x84   :  { %v17_v7 = vpop.permute.xlu0 %16  }
  0x85   :  { %20 = vst.msk [vmem:[#allocation0 + $0x2] ss:$8 sm:$0x3] %vm7_vm0, %v17_v7  }
  0x8c   :  { %v29_v8 = vld [vmem:[#allocation0] sm:$0xf]  ;;  %v34_v9 = vld [vmem:[#allocation0 + $0x8] sm:$0xf] }
  0x8d   :  { %32 = vst [vmem:[%s66_s1] sm:$0xf] %v29_v8 }
  0x8e   :  { %39 = vst [vmem:[%s66_s1 + $0x4] sm:$0xf] %v34_v9 }

// kernel: proto_layer_forward.1
= control target key start
LH: loop header
LB: loop body
LE: loop exit
PB: predicated region body
PF: predicated region fallthrough
CT: control target
= control target key end

     0   :  { %11 = vsyncpa [#allocation3], 0  ;;  %s2578_s0 = inlined_call_operand.vmem [shape: f32[2,64,32], index: 0, kind: input, shape index: {}]   ;;  %s2579_s1 = inlined_call_operand.vmem [shape: f32[32,128], index: 1, kind: input, shape index: {}]   ;;  %s2580_s2 = inlined_call_operand.vmem [shape: f32[2,64,128], index: 2, kind: output, shape index: {0}]   ;;  %s2581_s3 = inlined_call_operand.vmem [shape: f32[2,1,128], index: 3, kind: output, shape index: {1}]   ;;  %s2582_s4 = inlined_call_operand.hbm [shape: s32[2,1,128], index: 4, kind: output, shape index: {2}]   ;;  %s2583_s5 = inlined_call_operand.vmem [shape: f32[2,128,32], index: 5, kind: output, shape index: {3}]  }
   0x1   :  { %13 = vsyncpa [#allocation3 + $0x1], 0  ;;  %s1760_s18 = smov 0   ;;  %s1762_s19 = smov 0  }
   0x2   :  { %s1764_s20 = smov 0   ;;  %s1766_s21 = smov 0  }
   0x3 LB: > { %s1781_s22 = sadd.s32 4294967295, %s1727_s21   ;;  %s1526_s23 = sadd.s32 4294967294, %s1727_s21   ;;  %s1727_s21 = sphi %s1766_s21, %s2617_s21   ;;  %s1723_s20 = sphi %s1764_s20, %s2616_s20   ;;  %s1719_s19 = sphi %s1762_s19, %s2615_s19   ;;  %s1715_s18 = sphi %s1760_s18, %s2614_s18  }
   0x4   : > { %s1785_s24 = sadd.s32 1, %s1727_s21   ;;  %s125_s25 = sadd.s32 1, %s1723_s20 }
   0x5   : > { %s122_s26 = ssub.s32 %s1727_s21, %s1785_s24  ;;  %p135_p0 = scmp.ne.s32.totalorder %s1723_s20, %s1719_s19 }
   0x6   : > { %p123_p1 = scmp.eq.s32.totalorder %s122_s26, 0  ;;  %p136_p2 = scmp.eq.s32.totalorder %s1781_s22, 1 }
   0x7   : > { %p141_p3 = scmp.ne.s32.totalorder %s1719_s19, %s1715_s18  ;;  %p142_p4 = scmp.eq.s32.totalorder %s1526_s23, 1 }
   0x8   : > { %s1796_s27 = scalar_select %p123_p1, %s1723_s20, %s125_s25  }
   0x9   : > { %p1798_p5 = por %p136_p2, %p135_p0  ;;  %p1802_p6 = por %p142_p4, %p141_p3 }
   0xa   : > { %p1529_p7 = scmp.ge.s32.totalorder %s1727_s21, 1  ;;  %p197_p8 = scmp.lt.s32.totalorder %s1727_s21, 3 }
   0xc   : > { %p198_p9 = pnand %p1529_p7, %p197_p8 }
   0xd   : > { %p237_p10 = scmp.lt.s32.totalorder (!%p198_p9), %s1781_s22, 1  ;;  %s1395_s14 = scalar_lea.hbm (!%p198_p9), %s2582_s4, %s1781_s22 }
   0xe   : > { %201 = sbr.rel (%p198_p9) target bundleno = 940 (0x3ac), region = 28  ;;  %s1399_s16 = sshll.u32 (!%p198_p9), %s1395_s14, 4  ;;  %s1400_s16 = int_to_ptr.hbm [resolvable:$true] %s1399_s16 }
   0xf   : > { %s1679_s23 = sshra.s32 (!%p198_p9), %s1400_s16, 4  ;;  %s1680_s23 = int_to_ptr.hbm [resolvable:$true] %s1679_s23 }
  0x10   : > { %s1681_s25 = scalar_lea.hbm (!%p198_p9), %s1680_s23, 1  ;;  %p1686_p0 = scmp.lt.s32.totalorder (!%p198_p9), %s1680_s23, %s2582_s4 }
  0x11   : > { %p1682_p11 = scmp.ne.s32.totalorder (!%p198_p9), %s1680_s23, %s1681_s25 }
  0x13   : > { %s1810_s30 = scalar_select %p237_p10, %s1781_s22, 1  ;;  %vm271_vm0 = vcmask 261120   ;;  %v683_v28 = vld [vmem:[%s2579_s1 + $0x18] sm:$0xff]  ;;  %v682_v39 = vld [vmem:[%s2579_s1 + $0x10] sm:$0xff]  ;;  %v1908_v43 = vld [vmem:[%s2579_s1 + $0x8] sm:$0xff] }
  0x14   : > { %v1887_v33 = vand.u32 4294901760, %v683_v28  ;;  %v1911_v46 = vand.u32 4294901760, %v682_v39  ;;  %v1917_v49 = vld [vmem:[%s2579_s1] sm:$0xff]  ;;  %v1928_v55 = vand.u32 4294901760, %v1908_v43  ;;  %p1683_p12 = pnand %p1682_p11, %p1798_p5 }
  0x15   : > { %s1562_s6 = sshll.u32 %s1810_s30, 6  ;;  %v1939_v62 = vand.u32 4294901760, %v1917_v49  ;;  %s249_s8 = scalar_lea.vmem %s2581_s3, %s1810_s30 }
  0x16   : > { %s1818_s9 = scalar_lea.vmem %s2578_s0, %s1562_s6  ;;  %940 = vmatpush.msra.mxu3 %v1887_v33  ;;  %721 = vmatpush.msra.mxu0 %v1887_v33  ;;  %v1903_v42 = vsub.f32 %v683_v28, %v1887_v33  ;;  %v1925_v54 = vsub.f32 %v682_v39, %v1911_v46  ;;  %s2431_s26 = scalar_lea.vmem %s2580_s2, %s1562_s6 }
  0x17   : > { %v1821_v0 = vld [vmem:[%s1818_s9 + $0x20] sm:$0xff]  ;;  %v1824_v1 = vld [vmem:[%s1818_s9 + $0x10] sm:$0xff]  ;;  %v1836_v6 = vld [vmem:[%s1818_s9 + $0x28] sm:$0xff]  ;;  %s1564_s11 = sshll.u32 %s1810_s30, 7  ;;  %p1684_p13 = pneg %p1683_p12 }
  0x18   : > { %v1827_v2 = vld [vmem:[%s1818_s9] sm:$0xff]  ;;  %v267_v3 = vmul.f32 %v1821_v0, %v1821_v0  ;;  %v265_v4 = vmul.f32 %v1824_v1, %v1824_v1  ;;  %v1839_v7 = vld [vmem:[%s1818_s9 + $0x18] sm:$0xff]  ;;  %v1845_v11 = vld [vmem:[%s1818_s9 + $0x8] sm:$0xff]  ;;  %v268_v12 = vmul.f32 %v1836_v6, %v1836_v6  ;;  %876 = vmatpush.msra.mxu2 %v1903_v42  ;;  %942 = vmatpush.msra.mxu3 %v1911_v46  ;;  %s1685_s30 = scalar_lea.hbm %s2582_s4, 2 }
  0x19   : > { %v263_v5 = vmul.f32 %v1827_v2, %v1827_v2  ;;  %v266_v13 = vmul.f32 %v1839_v7, %v1839_v7  ;;  %v264_v14 = vmul.f32 %v1845_v11, %v1845_v11  ;;  %v1857_v18 = vld [vmem:[%s1818_s9 + $0x38] sm:$0xff]  ;;  %v1860_v19 = vld [vmem:[%s1818_s9 + $0x30] sm:$0xff]  ;;  %723 = vmatpush.msra.mxu0 %v1911_v46  ;;  %p1687_p1 = scmp.lt.s32.totalorder %s1685_s30, %s1681_s25 }
  0x1a   : > { %v284_v8 = vsel %vm271_vm0, %v267_v3, 0.0  ;;  %v278_v9 = vsel %vm271_vm0, %v265_v4, 0.0  ;;  %v287_v15 = vsel %vm271_vm0, %v268_v12, 0.0  ;;  %v270_v20 = vmul.f32 %v1857_v18, %v1857_v18  ;;  %879 = vmatpush.msra.mxu2 %v1925_v54  ;;  %944 = vmatpush.msra.mxu3 %v1928_v55 }
  0x1b   : > { %v272_v10 = vsel %vm271_vm0, %v263_v5, 0.0  ;;  %285 = vadd.xlane.f32.xlu2 %v284_v8  ;;  %279 = vadd.xlane.f32.xlu1 %v278_v9  ;;  %v281_v16 = vsel %vm271_vm0, %v266_v13, 0.0  ;;  %v275_v17 = vsel %vm271_vm0, %v264_v14, 0.0  ;;  %v269_v21 = vmul.f32 %v1860_v19, %v1860_v19  ;;  %p1688_p2 = por %p1687_p1, %p1686_p0 }
  0x1c   : > { %273 = vadd.xlane.f32.xlu0 %v272_v10  ;;  %v293_v22 = vsel %vm271_vm0, %v270_v20, 0.0  ;;  %v807_v4 = vand.u32 4294901760, %v1903_v42  ;;  %725 = vmatpush.msra.mxu0 %v1928_v55 }
  0x1d   : > { %v290_v23 = vsel %vm271_vm0, %v269_v21, 0.0  ;;  %946 = vmatpush.msra.mxu3 %v1939_v62  ;;  %p1689_p3 = pnand %p1688_p2, %p1684_p13 }
  0x1e   : > { %727 = vmatpush.msra.mxu0 %v1939_v62 }
  0x20   : > { %1011 = vmatpush.msrb.mxu0 %v807_v4 }
  0x23   : > { %288 = vadd.xlane.f32.xlu2 %v287_v15  ;;  %282 = vadd.xlane.f32.xlu1 %v281_v16 }
  0x24   : > { %276 = vadd.xlane.f32.xlu0 %v275_v17 }
  0x2b   : > { %294 = vadd.xlane.f32.xlu1 %v293_v22 }
  0x2c   : > { %291 = vadd.xlane.f32.xlu0 %v290_v23 }
  0x8e   : > { %v1868_v24 = vpop.xlane.xlu2 %285  ;;  %v1870_v25 = vpop.xlane.xlu1 %279 }
  0x8f   : > { %1613 = vrsqrt.f32 %v1868_v24  ;;  %v1873_v26 = vpop.xlane.xlu0 %273  ;;  %vm351_vm1 = vcmp.eq.f32.partialorder %v1868_v24, inf  ;;  %vm353_vm2 = vcmp.eq.f32.partialorder %v1868_v24, 0.0  ;;  %v354_v20 = vand.u32 2147483648, %v1868_v24 }
  0x90   : > { %1615 = vrsqrt.f32 %v1870_v25  ;;  %vm303_vm3 = vcmp.eq.f32.partialorder %v1873_v26, inf  ;;  %v306_v10 = vand.u32 2147483648, %v1873_v26  ;;  %vm305_vm4 = vcmp.eq.f32.partialorder %v1873_v26, 0.0 }
  0x91   : > { %1617 = vrsqrt.f32 %v1873_v26  ;;  %v330_v21 = vand.u32 2147483648, %v1870_v25  ;;  %vm327_vm12 = vcmp.eq.f32.partialorder %v1870_v25, inf }
  0x95   : > { %v1614_v27 = vpop.eup %1613 }
  0x96   : > { %v1880_v29 = vpop.eup %1615  ;;  %v345_v30 = vmul.f32 %v1614_v27, %v1868_v24  ;;  %v1883_v31 = vpop.xlane.xlu2 %288 }
  0x97   : > { %v1885_v32 = vpop.xlane.xlu1 %282  ;;  %v1618_v34 = vpop.eup %1617  ;;  %1619 = vrsqrt.f32 %v1883_v31  ;;  %v321_v37 = vmul.f32 %v1880_v29, %v1870_v25  ;;  %vm363_vm5 = vcmp.eq.f32.partialorder %v1883_v31, inf  ;;  %vm365_vm6 = vcmp.eq.f32.partialorder %v1883_v31, 0.0 }
  0x98   : > { %v1890_v35 = vpop.xlane.xlu0 %276  ;;  %v346_v36 = vmul.f32 %v1614_v27, %v345_v30  ;;  %v297_v38 = vmul.f32 %v1618_v34, %v1873_v26  ;;  %1621 = vrsqrt.f32 %v1885_v32 }
  0x99   : > { %1623 = vrsqrt.f32 %v1890_v35  ;;  %v322_v44 = vmul.f32 %v1880_v29, %v321_v37  ;;  %vm315_vm7 = vcmp.eq.f32.partialorder %v1890_v35, inf  ;;  %vm317_vm8 = vcmp.eq.f32.partialorder %v1890_v35, 0.0 }
  0x9a   : > { %v347_v40 = vmul.f32 0.5, %v346_v36  ;;  %v298_v41 = vmul.f32 %v1618_v34, %v297_v38 }
  0x9b   : > { %v323_v59 = vmul.f32 0.5, %v322_v44 }
  0x9c   : > { %v299_v45 = vmul.f32 0.5, %v298_v41  ;;  %v348_v48 = vsub.f32 1.5, %v347_v40 }
  0x9d   : > { %v1620_v47 = vpop.eup %1619  ;;  %v324_v13 = vsub.f32 1.5, %v323_v59 }
  0x9e   : > { %v1919_v50 = vpop.eup %1621  ;;  %v300_v51 = vsub.f32 1.5, %v299_v45  ;;  %v357_v52 = vmul.f32 %v1620_v47, %v1883_v31  ;;  %v349_v63 = vmul.f32 %v1614_v27, %v348_v48 }
  0x9f   : > { %v1922_v53 = vpop.xlane.xlu1 %294  ;;  %v333_v56 = vmul.f32 %v1919_v50, %v1885_v32  ;;  %v1624_v58 = vpop.eup %1623  ;;  %v325_v37 = vmul.f32 %v1880_v29, %v324_v13 }
  0xa0   : > { %1625 = vrsqrt.f32 %v1922_v53  ;;  %v1935_v57 = vpop.xlane.xlu0 %291  ;;  %v301_v60 = vmul.f32 %v1618_v34, %v300_v51  ;;  %v358_v61 = vmul.f32 %v1620_v47, %v357_v52  ;;  %v309_v3 = vmul.f32 %v1624_v58, %v1890_v35 }
  0xa1   : > { %v334_v9 = vmul.f32 %v1919_v50, %v333_v56  ;;  %1627 = vrsqrt.f32 %v1935_v57  ;;  %v350_v17 = vmul.f32 %v349_v63, %v1868_v24  ;;  %v318_v51 = vand.u32 2147483648, %v1890_v35 }
  0xa2   : > { %v302_v5 = vmul.f32 %v301_v60, %v1873_v26  ;;  %v359_v8 = vmul.f32 0.5, %v358_v61  ;;  %v310_v12 = vmul.f32 %v1624_v58, %v309_v3  ;;  %vm387_vm9 = vcmp.eq.f32.partialorder %v1922_v53, inf }
  0xa3   : > { %v335_v30 = vmul.f32 0.5, %v334_v9  ;;  %v352_v45 = vsel %vm351_vm1, %v1868_v24, %v350_v17  ;;  %vm389_vm10 = vcmp.eq.f32.partialorder %v1922_v53, 0.0  ;;  %v1978_v52 = vmul.f32 %v325_v37, %v1870_v25 }
  0xa4   : > { %v304_v14 = vsel %vm303_vm3, %v1873_v26, %v302_v5  ;;  %v360_v15 = vsub.f32 1.5, %v359_v8  ;;  %v366_v26 = vand.u32 2147483648, %v1883_v31  ;;  %v311_v34 = vmul.f32 0.5, %v310_v12 }
  0xa5   : > { %v307_v22 = vsel %vm305_vm4, %v306_v10, %v304_v14  ;;  %v390_v60 = vand.u32 2147483648, %v1922_v53  ;;  %v1986_v61 = vsel %vm353_vm2, %v354_v20, %v352_v45  ;;  %vm375_vm11 = vcmp.eq.f32.partialorder %v1935_v57, inf }
  0xa6   : > { %v1626_v16 = vpop.eup %1625  ;;  %v1959_v23 = vmax.f32 %v307_v22, 1e-12  ;;  %v520_v27 = vmul.f32 1e+12, %v307_v22  ;;  %v361_v28 = vmul.f32 %v1620_v47, %v360_v15  ;;  %v312_v41 = vsub.f32 1.5, %v311_v34 }
  0xa7   : > { %v1628_v36 = vpop.eup %1627  ;;  %v381_v39 = vmul.f32 %v1626_v16, %v1922_v53  ;;  %v336_v47 = vsub.f32 1.5, %v335_v30  ;;  %v808_v9 = vsub.f32 %v1903_v42, %v807_v4  ;;  %v813_v14 = vand.u32 4294901760, %v1925_v54 }
  0xa8   : > { %v362_v38 = vmul.f32 %v361_v28, %v1883_v31  ;;  %1629 = vrcp.f32 %v1959_v23  ;;  %v528_v40 = vmin.f32 %v520_v27, 1.0  ;;  %v369_v44 = vmul.f32 %v1628_v36, %v1935_v57 }
  0xa9   : > { %v382_v29 = vmul.f32 %v1626_v16, %v381_v39  ;;  %v313_v48 = vmul.f32 %v1624_v58, %v312_v41  ;;  %v1992_v5 = vmul.f32 %v1919_v50, %v336_v47  ;;  %v809_v42 = vand.u32 4294901760, %v808_v9  ;;  %1015 = vmatpush.msrb.mxu0 %v813_v14 }
  0xaa   : > { %v364_v56 = vsel %vm363_vm5, %v1883_v31, %v362_v38  ;;  %v1988_v58 = vadd.f32 0.001, %v528_v40  ;;  %v370_v3 = vmul.f32 %v1628_v36, %v369_v44  ;;  %v818_v4 = vsub.f32 %v1908_v43, %v1928_v55 }
  0xab   : > { %v383_v59 = vmul.f32 0.5, %v382_v29  ;;  %v314_v63 = vmul.f32 %v313_v48, %v1890_v35  ;;  %v2000_v24 = vsel %vm365_vm6, %v366_v26, %v364_v56  ;;  %v814_v20 = vsub.f32 %v1925_v54, %v813_v14  ;;  %810 = vmatpush.msra.mxu1 %v809_v42 }
  0xac   : > { %v371_v13 = vmul.f32 0.5, %v370_v3  ;;  %1631 = vrcp.f32 %v1988_v58  ;;  %v819_v27 = vand.u32 4294901760, %v818_v4  ;;  %882 = vmatpush.msra.mxu2 %v818_v4  ;;  %v378_v30 = vand.u32 2147483648, %v1935_v57 }
  0xad   : > { %v384_v8 = vsub.f32 1.5, %v383_v59  ;;  %v316_v12 = vsel %vm315_vm7, %v1890_v35, %v314_v63  ;;  %v824_v35 = vsub.f32 %v1917_v49, %v1939_v62  ;;  %v815_v26 = vand.u32 4294901760, %v814_v20 }
  0xae   : > { %v1996_v10 = vpop.eup %1629  ;;  %v319_v50 = vsel %vm317_vm8, %v318_v51, %v316_v12  ;;  %v372_v17 = vsub.f32 1.5, %v371_v13  ;;  %v820_v34 = vsub.f32 %v818_v4, %v819_v27  ;;  %1019 = vmatpush.msrb.mxu0 %v819_v27  ;;  %vm377_vm13 = vcmp.eq.f32.partialorder %v1935_v57, 0.0 }
  0xaf   : > { %v385_v15 = vmul.f32 %v1626_v16, %v384_v8  ;;  %v521_v31 = vmul.f32 1e+12, %v319_v50  ;;  %v401_v16 = vmul.f32 %v1996_v10, %v1959_v23  ;;  %v825_v37 = vand.u32 4294901760, %v824_v35  ;;  %885 = vmatpush.msra.mxu2 %v824_v35  ;;  %816 = vmatpush.msra.mxu1 %v815_v26 }
  0xb0   : > { %v373_v43 = vmul.f32 %v1628_v36, %v372_v17  ;;  %v2022_v39 = vmax.f32 %v319_v50, 1e-12  ;;  %v821_v44 = vand.u32 4294901760, %v820_v34  ;;  %vm406_vm14 = vweird.f32 %v1996_v10 }
  0xb1   : > { %v386_v22 = vmul.f32 %v385_v15, %v1922_v53  ;;  %v529_v28 = vmin.f32 %v521_v31, 1.0  ;;  %v402_v38 = vsub.f32 1.0, %v401_v16  ;;  %v826_v45 = vsub.f32 %v824_v35, %v825_v37  ;;  %1023 = vmatpush.msrb.mxu0 %v825_v37 }
  0xb2   : > { %v374_v40 = vmul.f32 %v373_v43, %v1935_v57  ;;  %v2030_v47 = vpop.eup %1631  ;;  %822 = vmatpush.msra.mxu1 %v821_v44  ;;  %v409_v63 = vand.u32 2147483647, %v1959_v23  ;;  %vm405_vm15 = vweird.f32 %v1959_v23  ;;  %v411_v8 = vand.u32 2147483648, %v1959_v23 }
  0xb3   : > { %v388_v54 = vsel %vm387_vm9, %v1922_v53, %v386_v22  ;;  %v2032_v29 = vadd.f32 0.001, %v529_v28  ;;  %v403_v48 = vmul.f32 %v1996_v10, %v402_v38  ;;  %v827_v59 = vand.u32 4294901760, %v826_v45  ;;  %vm2070_vm1 = vmor %vm405_vm15, %vm406_vm14 }
  0xb4   : > { %v391_v49 = vsel %vm389_vm10, %v390_v60, %v388_v54  ;;  %v376_v53 = vsel %vm375_vm11, %v1935_v57, %v374_v40  ;;  %v2046_v60 = vsel %vm327_vm12, %v1870_v25, %v1978_v52  ;;  %v553_v9 = vmul.f32 %v2030_v47, %v1988_v58 }
  0xb5   : > { %v2028_v36 = vmax.f32 %v391_v49, 1e-12  ;;  %v527_v41 = vmul.f32 1e+12, %v391_v49  ;;  %v2040_v56 = vsel %vm377_vm13, %v378_v30, %v376_v53  ;;  %v404_v57 = vadd.f32 %v1996_v10, %v403_v48  ;;  %828 = vmatpush.msra.mxu1 %v827_v59 }
  0xb6   : > { %v2058_v12 = vmul.f32 1e+12, %v2000_v24  ;;  %v2062_v52 = vmul.f32 %v1992_v5, %v1885_v32  ;;  %v2066_v13 = vmax.f32 %v2040_v56, 1e-12  ;;  %v554_v5 = vsub.f32 1.0, %v553_v9 }
  0xb7   : > { %1633 = vrcp.f32 %v2028_v36  ;;  %v535_v51 = vmin.f32 %v527_v41, 1.0  ;;  %1070 = vmatpush.msrb.mxu1 %v1887_v33  ;;  %v408_v23 = vsel %vm2070_vm1, %v1996_v10, %v404_v57  ;;  %vm557_vm2 = vweird.f32 %v1988_v58 }
  0xb8   : > { %1635 = vrcp.f32 %v2022_v39  ;;  %vm410_vm3 = vcmp.eq.f32.partialorder %v409_v63, 8.507059e+37  ;;  %v412_v50 = vor.u32 1.1754944e-38, %v411_v8  ;;  %v561_v15 = vand.u32 2147483647, %v1988_v58 }
  0xb9   : > { %v2051_v3 = vadd.f32 0.001, %v535_v51  ;;  %1637 = vrcp.f32 %v2032_v29  ;;  %v563_v42 = vand.u32 2147483648, %v1988_v58  ;;  %1072 = vmatpush.msrb.mxu1 %v1911_v46  ;;  %v555_v33 = vmul.f32 %v2030_v47, %v554_v5 }
  0xba   : > { %vm558_vm4 = vweird.f32 %v2030_v47  ;;  %v514_v31 = vand.u32 2147483647, %v2028_v36  ;;  %v516_v10 = vand.u32 2147483648, %v2028_v36  ;;  %v2090_v20 = vsel %vm410_vm3, %v412_v50, %v408_v23 }
  0xbb   : > { %1639 = vrcp.f32 %v2051_v3  ;;  %vm510_vm5 = vweird.f32 %v2028_v36  ;;  %1074 = vmatpush.msrb.mxu1 %v1928_v55  ;;  %v556_v46 = vadd.f32 %v2030_v47, %v555_v33  ;;  %vm562_vm6 = vcmp.eq.f32.partialorder %v561_v15, 8.507059e+37  ;;  %vm559_vm8 = vmor %vm557_vm2, %vm558_vm4 }
  0xbc   : > { %1641 = vrcp.f32 %v2066_v13  ;;  %v564_v27 = vor.u32 1.1754944e-38, %v563_v42  ;;  %vm2100_vm9 = vcmp.eq.f32.partialorder %v514_v31, 8.507059e+37  ;;  %v517_v43 = vor.u32 1.1754944e-38, %v516_v10 }
  0xbd   : > { %v1634_v4 = vpop.eup %1633  ;;  %v666_v30 = vand.u32 2147483647, %v2051_v3  ;;  %1076 = vmatpush.msrb.mxu1 %v1939_v62  ;;  %v560_v26 = vsel %vm559_vm8, %v2030_v47, %v556_v46  ;;  %vm662_vm10 = vweird.f32 %v2051_v3  ;;  %v668_v54 = vand.u32 2147483648, %v2051_v3 }
  0xbe   : > { %v2087_v17 = vpop.eup %1635  ;;  %v506_v22 = vmul.f32 %v1634_v4, %v2028_v36  ;;  %vm511_vm7 = vweird.f32 %v1634_v4  ;;  %v565_v34 = vsel %vm562_vm6, %v564_v27, %v560_v26  ;;  %vm420_vm11 = vweird.f32 %v2022_v39 }
  0xbf   : > { %v2096_v35 = vpop.eup %1637  ;;  %v416_v58 = vmul.f32 %v2087_v17, %v2022_v39  ;;  %v566_v49 = vmul.f32 %v565_v34, %v2090_v20  ;;  %vm2117_vm12 = vmor %vm510_vm5, %vm511_vm7  ;;  %vm421_vm14 = vweird.f32 %v2087_v17  ;;  %vm2124_vm15 = vcmp.eq.f32.partialorder %v666_v30, 8.507059e+37 }
  0xc0   : > { %v507_v16 = vsub.f32 1.0, %v506_v22  ;;  %v426_v53 = vand.u32 2147483648, %v2022_v39  ;;  %v669_v48 = vor.u32 1.1754944e-38, %v668_v54  ;;  %v568_v59 = vmul.f32 %v2096_v35, %v2032_v29  ;;  %vm422_vm3 = vmor %vm420_vm11, %vm421_vm14 }
  0xc1   : > { %v1640_v55 = vpop.eup %1639  ;;  %v417_v40 = vsub.f32 1.0, %v416_v58  ;;  %v672_v36 = vmul.f32 %v566_v49, %v1827_v2  ;;  %vm339_vm1 = vcmp.eq.f32.partialorder %v1885_v32, inf  ;;  %v424_v8 = vand.u32 2147483647, %v2022_v39 }
  0xc2   : > { %v508_v37 = vmul.f32 %v1634_v4, %v507_v16  ;;  %v658_v38 = vmul.f32 %v1640_v55, %v2051_v3  ;;  %vm663_vm13 = vweird.f32 %v1640_v55  ;;  %v2122_v41 = vpop.eup %1641  ;;  %v427_v9 = vor.u32 1.1754944e-38, %v426_v53 }
  0xc3   : > { %v418_v51 = vmul.f32 %v2087_v17, %v417_v40  ;;  %v685_v14 = vsel %vm271_vm0, %v672_v36, 0  ;;  %vm2143_vm2 = vmor %vm662_vm10, %vm663_vm13  ;;  %v569_v15 = vsub.f32 1.0, %v568_v59  ;;  %vm573_vm4 = vweird.f32 %v2096_v35 }
  0xc4   : > { %v509_v44 = vadd.f32 %v1634_v4, %v508_v37  ;;  %v659_v45 = vsub.f32 1.0, %v658_v38  ;;  %v2148_v42 = vand.u32 4294901760, %v685_v14  ;;  %v576_v10 = vand.u32 2147483647, %v2032_v29 }
  0xc5   : > { %v419_v50 = vadd.f32 %v2087_v17, %v418_v51  ;;  %v570_v31 = vmul.f32 %v2096_v35, %v569_v15  ;;  %v578_v22 = vand.u32 2147483648, %v2032_v29  ;;  %vm425_vm5 = vcmp.eq.f32.partialorder %v424_v8, 8.507059e+37 }
  0xc6   : > { %v513_v57 = vsel %vm2117_vm12, %v1634_v4, %v509_v44  ;;  %v660_v63 = vmul.f32 %v1640_v55, %v659_v45  ;;  %830 = vmatmul.f32.vlgmr.msra.gmra.mxu1 %v2148_v42  ;;  %vm572_vm6 = vweird.f32 %v2032_v29  ;;  %vm495_vm7 = vweird.f32 %v2066_v13 }
  0xc7   : > { %v518_v23 = vsel %vm2100_vm9, %v517_v43, %v513_v57  ;;  %v423_v3 = vsel %vm422_vm3, %v2087_v17, %v419_v50  ;;  %v571_v27 = vadd.f32 %v2096_v35, %v570_v31  ;;  %vm574_vm8 = vmor %vm572_vm6, %vm573_vm4  ;;  %v579_v43 = vor.u32 1.1754944e-38, %v578_v22 }
  0xc8   : > { %v551_v4 = vmul.f32 %v518_v23, %v1857_v18  ;;  %v661_v33 = vadd.f32 %v1640_v55, %v660_v63  ;;  %v729_v18 = vsub.f32 %v685_v14, %v2148_v42  ;;  %v2167_v17 = vsel %vm425_vm5, %v427_v9, %v423_v3 }
  0xc9   : > { %v491_v29 = vmul.f32 %v2122_v41, %v2066_v13  ;;  %v575_v30 = vsel %vm574_vm8, %v2096_v35, %v571_v27  ;;  %vm577_vm9 = vcmp.eq.f32.partialorder %v576_v10, 8.507059e+37  ;;  %vm496_vm10 = vweird.f32 %v2122_v41 }
  0xca   : > { %v665_v46 = vsel %vm2143_vm2, %v1640_v55, %v661_v33  ;;  %1294 = vmatpush.msrb.mxu2 %v551_v4  ;;  %1565 = vmatpush.msrb.mxu3 %v551_v4  ;;  %v730_v16 = vand.u32 4294901760, %v729_v18  ;;  %v501_v55 = vand.u32 2147483648, %v2066_v13  ;;  %v580_v54 = vsel %vm577_vm9, %v579_v43, %v575_v30  ;;  %vm497_vm13 = vmor %vm495_vm7, %vm496_vm10 }
  0xcb   : > { %v670_v39 = vsel %vm2124_vm15, %v669_v48, %v665_v46  ;;  %888 = vmatmul.f32.vlgmr.msra.gmra.mxu2 %v729_v18  ;;  %v492_v58 = vsub.f32 1.0, %v491_v29  ;;  %v499_v34 = vand.u32 2147483647, %v2066_v13  ;;  %vm329_vm11 = vcmp.eq.f32.partialorder %v1870_v25, 0.0 }
  0xcc   : > { %v2171_v28 = vmul.f32 %v670_v39, %v518_v23  ;;  %950 = vmatmul.f32.vlgmr.msra.gmra.mxu3 %v730_v16  ;;  %v731_v26 = vsub.f32 %v729_v18, %v730_v16  ;;  %v340_v37 = vsel %vm339_vm1, %v1885_v32, %v2062_v52  ;;  %v342_v35 = vand.u32 2147483648, %v1885_v32 }
  0xcd   : > { %v581_v38 = vmul.f32 %v580_v54, %v2167_v17  ;;  %v331_v49 = vsel %vm329_vm11, %v330_v21, %v2046_v60  ;;  %v533_v62 = vmin.f32 %v2058_v12, 1.0  ;;  %v493_v44 = vmul.f32 %v2122_v41, %v492_v58 }
  0xce   : > { %v732_v40 = vand.u32 4294901760, %v731_v26  ;;  %v524_v45 = vmul.f32 1e+12, %v1986_v61  ;;  %vm341_vm12 = vcmp.eq.f32.partialorder %v1885_v32, 0.0  ;;  %v502_v52 = vor.u32 1.1754944e-38, %v501_v55 }
  0xcf   : > { %v673_v47 = vmul.f32 %v581_v38, %v1845_v11  ;;  %v343_v53 = vsel %vm341_vm12, %v342_v35, %v340_v37  ;;  %v494_v25 = vadd.f32 %v2122_v41, %v493_v44  ;;  %vm500_vm14 = vcmp.eq.f32.partialorder %v499_v34, 8.507059e+37 }
  0xd0   : > { %733 = vmatmul.f32.vlgmr.msra.gmra.mxu0 %v732_v40  ;;  %v397_v21 = vmax.f32 %v2000_v24, 1e-12  ;;  %v522_v60 = vmul.f32 1e+12, %v331_v49  ;;  %v2206_v48 = vadd.f32 0.001, %v533_v62 }
  0xd1   : > { %v688_v12 = vsel %vm271_vm0, %v673_v47, 0  ;;  %v498_v32 = vsel %vm497_vm13, %v2122_v41, %v494_v25  ;;  %v523_v13 = vmul.f32 1e+12, %v343_v53  ;;  %v396_v59 = vmax.f32 %v1986_v61, 1e-12 }
  0xd2   : > { %v2203_v36 = vand.u32 4294901760, %v688_v12  ;;  %1643 = vrcp.f32 %v397_v21  ;;  %v2208_v51 = vsel %vm500_vm14, %v502_v52, %v498_v32  ;;  %v532_v57 = vmin.f32 %v524_v45, 1.0 }
  0xd3   : > { %v550_v24 = vmul.f32 %v2208_v51, %v1860_v19  ;;  %v530_v8 = vmin.f32 %v522_v60, 1.0  ;;  %v526_v9 = vmul.f32 1e+12, %v2040_v56  ;;  %1645 = vrcp.f32 %v2206_v48 }
  0xd4   : > { %834 = vmatmul.f32.gmra.mxu1 %v2203_v36  ;;  %v737_v63 = vsub.f32 %v688_v12, %v2203_v36  ;;  %v531_v14 = vmin.f32 %v523_v13, 1.0  ;;  %1647 = vrcp.f32 %v396_v59  ;;  %v2217_v23 = vmax.f32 %v331_v49, 1e-12 }
  0xd5   : > { %1295 = vmatpush.msrb.mxu2 %v550_v24  ;;  %1566 = vmatpush.msrb.mxu3 %v550_v24  ;;  %v2219_v5 = vadd.f32 0.001, %v532_v57  ;;  %v2221_v19 = vadd.f32 0.001, %v530_v8  ;;  %v534_v50 = vmin.f32 %v526_v9, 1.0  ;;  %vm480_vm15 = vweird.f32 %v397_v21 }
  0xd6   : > { %v738_v41 = vand.u32 4294901760, %v737_v63  ;;  %893 = vmatmul.f32.gmra.mxu2 %v737_v63  ;;  %v484_v56 = vand.u32 2147483647, %v397_v21  ;;  %v486_v4 = vand.u32 2147483648, %v397_v21  ;;  %v2224_v3 = vmax.f32 %v343_v53, 1e-12 }
  0xd7   : > { %1649 = vrcp.f32 %v2219_v5  ;;  %v2226_v31 = vadd.f32 0.001, %v531_v14  ;;  %v2231_v18 = vadd.f32 0.001, %v534_v50  ;;  %v469_v39 = vand.u32 2147483647, %v396_v59 }
  0xd8   : > { %v1644_v61 = vpop.eup %1643  ;;  %956 = vmatmul.f32.gmra.mxu3 %v738_v41  ;;  %1651 = vrcp.f32 %v2217_v23  ;;  %v487_v16 = vor.u32 1.1754944e-38, %v486_v4  ;;  %v471_v29 = vand.u32 2147483648, %v396_v59  ;;  %vm485_vm3 = vcmp.eq.f32.partialorder %v484_v56, 8.507059e+37 }
  0xd9   : > { %v476_v15 = vmul.f32 %v1644_v61, %v397_v21  ;;  %vm481_vm1 = vweird.f32 %v1644_v61  ;;  %v2228_v10 = vpop.eup %1645  ;;  %1653 = vrcp.f32 %v2224_v3  ;;  %v739_v55 = vsub.f32 %v737_v63, %v738_v41 }
  0xda   : > { %v1648_v22 = vpop.eup %1647  ;;  %1655 = vrcp.f32 %v2221_v19  ;;  %vm2236_vm2 = vmor %vm480_vm15, %vm481_vm1  ;;  %v2245_v54 = vmul.f32 %v2228_v10, %v2206_v48  ;;  %vm465_vm4 = vweird.f32 %v396_v59  ;;  %vm2250_vm6 = vcmp.eq.f32.partialorder %v469_v39, 8.507059e+37 }
  0xdb   : > { %v477_v33 = vsub.f32 1.0, %v476_v15  ;;  %v461_v43 = vmul.f32 %v1648_v22, %v396_v59  ;;  %1657 = vrcp.f32 %v2226_v31  ;;  %vm466_vm5 = vweird.f32 %v1648_v22 }
  0xdc   : > { %1659 = vrcp.f32 %v2231_v18  ;;  %v472_v40 = vor.u32 1.1754944e-38, %v471_v29  ;;  %v454_v44 = vand.u32 2147483647, %v2224_v3  ;;  %vm2263_vm7 = vmor %vm465_vm4, %vm466_vm5  ;;  %v621_v53 = vand.u32 2147483647, %v2219_v5 }
  0xdd   : > { %v478_v46 = vmul.f32 %v1644_v61, %v477_v33  ;;  %v2241_v26 = vpop.eup %1649  ;;  %v462_v58 = vsub.f32 1.0, %v461_v43  ;;  %v623_v25 = vand.u32 2147483648, %v2219_v5  ;;  %v740_v21 = vand.u32 4294901760, %v739_v55 }
  0xde   : > { %v613_v35 = vmul.f32 %v2241_v26, %v2219_v5  ;;  %v2256_v38 = vpop.eup %1651  ;;  %v629_v12 = vsub.f32 1.0, %v2245_v54  ;;  %vm617_vm8 = vweird.f32 %v2219_v5  ;;  %vm450_vm9 = vweird.f32 %v2224_v3 }
  0xdf   : > { %v479_v30 = vadd.f32 %v1644_v61, %v478_v46  ;;  %v463_v62 = vmul.f32 %v1648_v22, %v462_v58  ;;  %v1654_v45 = vpop.eup %1653  ;;  %v456_v57 = vand.u32 2147483648, %v2224_v3  ;;  %vm602_vm10 = vweird.f32 %v2226_v31  ;;  %741 = vmatmul.f32.gmra.mxu0 %v740_v21 }
  0xe0   : > { %v2269_v60 = vpop.eup %1655  ;;  %v446_v13 = vmul.f32 %v1654_v45, %v2224_v3  ;;  %v614_v59 = vsub.f32 1.0, %v613_v35  ;;  %v431_v24 = vmul.f32 %v2256_v38, %v2217_v23  ;;  %vm2281_vm11 = vcmp.eq.f32.partialorder %v454_v44, 8.507059e+37 }
  0xe1   : > { %v483_v34 = vsel %vm2236_vm2, %v1644_v61, %v479_v30  ;;  %v464_v32 = vadd.f32 %v1648_v22, %v463_v62  ;;  %vm618_vm12 = vweird.f32 %v2241_v26  ;;  %v606_v50 = vand.u32 2147483647, %v2226_v31 }
  0xe2   : > { %v2258_v49 = vsel %vm485_vm3, %v487_v16, %v483_v34  ;;  %v447_v8 = vsub.f32 1.0, %v446_v13  ;;  %v432_v15 = vsub.f32 1.0, %v431_v24  ;;  %vm451_vm13 = vweird.f32 %v1654_v45 }
  0xe3   : > { %v549_v47 = vmul.f32 %v2258_v49, %v1836_v6  ;;  %v1658_v6 = vpop.eup %1657  ;;  %v468_v63 = vsel %vm2263_vm7, %v1648_v22, %v464_v32  ;;  %v615_v22 = vmul.f32 %v2241_v26, %v614_v59  ;;  %v608_v46 = vand.u32 2147483648, %v2226_v31  ;;  %vm452_vm1 = vmor %vm450_vm9, %vm451_vm13 }
  0xe4   : > { %v598_v41 = vmul.f32 %v1658_v6, %v2226_v31  ;;  %v2286_v14 = vpop.eup %1659  ;;  %v2290_v61 = vsel %vm2250_vm6, %v472_v40, %v468_v63  ;;  %v448_v4 = vmul.f32 %v1654_v45, %v447_v8  ;;  %v433_v39 = vmul.f32 %v2256_v38, %v432_v15  ;;  %vm2327_vm6 = vmor %vm617_vm8, %vm618_vm12 }
  0xe5   : > { %1296 = vmatpush.msrb.mxu2 %v549_v47  ;;  %1567 = vmatpush.msrb.mxu3 %v549_v47  ;;  %v548_v56 = vmul.f32 %v2290_v61, %v1821_v0  ;;  %vm436_vm14 = vweird.f32 %v2256_v38  ;;  %v457_v16 = vor.u32 1.1754944e-38, %v456_v57  ;;  %vm603_vm15 = vweird.f32 %v1658_v6 }
  0xe6   : > { %v599_v33 = vsub.f32 1.0, %v598_v41  ;;  %v449_v27 = vadd.f32 %v1654_v45, %v448_v4  ;;  %v434_v0 = vadd.f32 %v2256_v38, %v433_v39  ;;  %vm435_vm2 = vweird.f32 %v2217_v23  ;;  %vm604_vm5 = vmor %vm602_vm10, %vm603_vm15 }
  0xe7   : > { %1297 = vmatpush.msrb.mxu2 %v548_v56  ;;  %1568 = vmatpush.msrb.mxu3 %v548_v56  ;;  %v439_v29 = vand.u32 2147483647, %v2217_v23  ;;  %v441_v30 = vand.u32 2147483648, %v2217_v23  ;;  %vm607_vm3 = vcmp.eq.f32.partialorder %v606_v50, 8.507059e+37  ;;  %vm2308_vm4 = vmor %vm435_vm2, %vm436_vm14  ;;  %v583_v3 = vmul.f32 %v2269_v60, %v2221_v19 }
  0xe8   : > { %v600_v43 = vmul.f32 %v1658_v6, %v599_v33  ;;  %v453_v55 = vsel %vm452_vm1, %v1654_v45, %v449_v27  ;;  %v616_v37 = vadd.f32 %v2241_v26, %v615_v22  ;;  %v609_v23 = vor.u32 1.1754944e-38, %v608_v46 }
  0xe9   : > { %v458_v35 = vsel %vm2281_vm11, %v457_v16, %v453_v55  ;;  %v438_v62 = vsel %vm2308_vm4, %v2256_v38, %v434_v0  ;;  %v442_v45 = vor.u32 1.1754944e-38, %v441_v30  ;;  %v584_v47 = vsub.f32 1.0, %v583_v3 }
  0xea   : > { %v601_v58 = vadd.f32 %v1658_v6, %v600_v43  ;;  %v547_v40 = vmul.f32 %v458_v35, %v1839_v7  ;;  %vm440_vm7 = vcmp.eq.f32.partialorder %v439_v29, 8.507059e+37  ;;  %vm588_vm9 = vweird.f32 %v2269_v60 }
  0xeb   : > { %v591_v21 = vand.u32 2147483647, %v2221_v19  ;;  %v443_v32 = vsel %vm440_vm7, %v442_v45, %v438_v62  ;;  %v585_v13 = vmul.f32 %v2269_v60, %v584_v47  ;;  %v643_v59 = vmul.f32 %v2286_v14, %v2231_v18 }
  0xec   : > { %v605_v44 = vsel %vm604_vm5, %v1658_v6, %v601_v58  ;;  %1298 = vmatpush.msrb.mxu2 %v547_v40  ;;  %1569 = vmatpush.msrb.mxu3 %v547_v40  ;;  %v593_v6 = vand.u32 2147483648, %v2221_v19  ;;  %vm2339_vm8 = vcmp.eq.f32.partialorder %v621_v53, 8.507059e+37  ;;  %v624_v24 = vor.u32 1.1754944e-38, %v623_v25  ;;  %v1662_v40 = vld [vmem:[%s1818_s9 + $0x28] sm:$0xff] }
  0xed   : > { %v610_v31 = vsel %vm607_vm3, %v609_v23, %v605_v44  ;;  %v546_v63 = vmul.f32 %v443_v32, %v1824_v1  ;;  %v630_v8 = vmul.f32 %v2228_v10, %v629_v12  ;;  %v620_v9 = vsel %vm2327_vm6, %v2241_v26, %v616_v37 }
  0xee   : > { %v611_v38 = vmul.f32 %v610_v31, %v458_v35  ;;  %v586_v41 = vadd.f32 %v2269_v60, %v585_v13  ;;  %vm587_vm10 = vweird.f32 %v2221_v19  ;;  %vm632_vm11 = vweird.f32 %v2206_v48 }
  0xef   : > { %vm589_vm12 = vmor %vm587_vm10, %vm588_vm9  ;;  %v594_v5 = vor.u32 1.1754944e-38, %v593_v6  ;;  %1299 = vmatpush.msrb.mxu2 %v546_v63  ;;  %1570 = vmatpush.msrb.mxu3 %v546_v63  ;;  %v545_v54 = vmul.f32 %v2167_v17, %v1845_v11  ;;  %vm633_vm13 = vweird.f32 %v2228_v10  ;;  %vm592_vm14 = vcmp.eq.f32.partialorder %v591_v21, 8.507059e+37 }
  0xf0   : > { %v675_v53 = vmul.f32 %v611_v38, %v1839_v7  ;;  %v590_v26 = vsel %vm589_vm12, %v2269_v60, %v586_v41  ;;  %v638_v19 = vand.u32 2147483648, %v2206_v48  ;;  %v625_v25 = vsel %vm2339_vm8, %v624_v24, %v620_v9  ;;  %vm2371_vm15 = vmor %vm632_vm11, %vm633_vm13 }
  0xf1   : > { %v595_v12 = vsel %vm592_vm14, %v594_v5, %v590_v26  ;;  %1300 = vmatpush.msrb.mxu2 %v545_v54  ;;  %1571 = vmatpush.msrb.mxu3 %v545_v54  ;;  %v544_v50 = vmul.f32 %v2090_v20, %v1827_v2  ;;  %v644_v15 = vsub.f32 1.0, %v643_v59  ;;  %v631_v11 = vadd.f32 %v2228_v10, %v630_v8  ;;  %v1664_v8 = vld [vmem:[%s1818_s9 + $0x38] sm:$0xff] }
  0xf2   : > { %v636_v17 = vand.u32 2147483647, %v2206_v48  ;;  %v596_v7 = vmul.f32 %v595_v12, %v443_v32  ;;  %v626_v56 = vmul.f32 %v625_v25, %v2290_v61  ;;  %v694_v4 = vsel %vm271_vm0, %v675_v53, 0  ;;  %v1661_v61 = vld [vmem:[%s1818_s9 + $0x20] sm:$0xff]  ;;  %v1663_v32 = vld [vmem:[%s1818_s9 + $0x30] sm:$0xff]  ;;  %s228_s9 = sand.u32 1, %s1719_s19  }
  0xf3   : > { %1301 = vmatpush.msrb.mxu2 %v544_v50  ;;  %1572 = vmatpush.msrb.mxu3 %v544_v50  ;;  %v639_v20 = vor.u32 1.1754944e-38, %v638_v19  ;;  %v645_v33 = vmul.f32 %v2286_v14, %v644_v15  ;;  %v635_v48 = vsel %vm2371_vm15, %v2228_v10, %v631_v11  ;;  %v2385_v39 = vand.u32 4294901760, %v694_v4  ;;  %s2484_s10 = scalar_lea.vmem [#allocation2], %s228_s9  ;;  %s1376_s17 = scalar_lea.sflag [#allocation3], %s228_s9 }
  0xf4   : > { %v674_v2 = vmul.f32 %v596_v7, %v1824_v1  ;;  %vm637_vm1 = vcmp.eq.f32.partialorder %v636_v17, 8.507059e+37  ;;  %vm647_vm2 = vweird.f32 %v2231_v18  ;;  %vm648_vm3 = vweird.f32 %v2286_v14  ;;  %s1397_s15 = sshll.u32 %s2484_s10, 4  ;;  %s1398_s15 = int_to_ptr.vmem [resolvable:$true] %s1397_s15 }
  0xf5   : > { %v676_v1 = vmul.f32 %v1661_v61, %v626_v56  ;;  %v653_v27 = vand.u32 2147483648, %v2231_v18  ;;  %v640_v16 = vsel %vm637_vm1, %v639_v20, %v635_v48  ;;  %v646_v43 = vadd.f32 %v2286_v14, %v645_v33  ;;  %vm2395_vm4 = vmor %vm647_vm2, %vm648_vm3 }
  0xf6   : > { %v691_v22 = vsel %vm271_vm0, %v674_v2, 0  ;;  %v651_v0 = vand.u32 2147483647, %v2231_v18  ;;  %v753_v55 = vsub.f32 %v694_v4, %v2385_v39  ;;  %v641_v58 = vmul.f32 %v640_v16, %v2258_v49 }
  0xf7   : > { %v2383_v46 = vand.u32 4294901760, %v691_v22  ;;  %v697_v34 = vsel %vm271_vm0, %v676_v1, 0  ;;  %v654_v3 = vor.u32 1.1754944e-38, %v653_v27  ;;  %v650_v35 = vsel %vm2395_vm4, %v2286_v14, %v646_v43 }
  0xf8   : > { %vm652_vm5 = vcmp.eq.f32.partialorder %v651_v0, 8.507059e+37  ;;  %v754_v23 = vand.u32 4294901760, %v753_v55  ;;  %v760_v62 = vand.u32 4294901760, %v697_v34  ;;  %v677_v44 = vmul.f32 %v1662_v40, %v641_v58 }
  0xf9   : > { %838 = vmatmul.f32.gmra.mxu1 %v2383_v46  ;;  %v745_v10 = vsub.f32 %v691_v22, %v2383_v46  ;;  %v655_v45 = vsel %vm652_vm5, %v654_v3, %v650_v35  ;;  %v679_v9 = vmul.f32 %v1664_v8, %v2171_v28 }
  0xfa   : > { %v755_v49 = vsub.f32 %v753_v55, %v754_v23  ;;  %v761_v47 = vsub.f32 %v697_v34, %v760_v62  ;;  %v656_v52 = vmul.f32 %v655_v45, %v2208_v51  ;;  %v700_v31 = vsel %vm271_vm0, %v677_v44, 0 }
  0xfb   : > { %898 = vmatmul.f32.gmra.mxu2 %v745_v10  ;;  %v746_v30 = vand.u32 4294901760, %v745_v10  ;;  %v768_v38 = vand.u32 4294901760, %v700_v31  ;;  %v706_v54 = vsel %vm271_vm0, %v679_v9, 0 }
  0xfc   : > { %v756_v14 = vand.u32 4294901760, %v755_v49  ;;  %v762_v21 = vand.u32 4294901760, %v761_v47  ;;  %v678_v13 = vmul.f32 %v1663_v32, %v656_v52  ;;  %v784_v19 = vand.u32 4294901760, %v706_v54 }
  0xfd   : > { %962 = vmatmul.f32.gmra.mxu3 %v746_v30  ;;  %v747_v37 = vsub.f32 %v745_v10, %v746_v30  ;;  %v769_v59 = vsub.f32 %v700_v31, %v768_v38 }
  0xfe   : > { %v763_v6 = vsub.f32 %v761_v47, %v762_v21  ;;  %v703_v57 = vsel %vm271_vm0, %v678_v13, 0  ;;  %v785_v12 = vsub.f32 %v706_v54, %v784_v19 }
  0xff   : > { %v748_v18 = vand.u32 4294901760, %v747_v37  ;;  %v770_v63 = vand.u32 4294901760, %v769_v59  ;;  %v776_v51 = vand.u32 4294901760, %v703_v57 }
 0x100   : > { %v764_v24 = vand.u32 4294901760, %v763_v6  ;;  %v786_v15 = vand.u32 4294901760, %v785_v12 }
 0x101   : > { %749 = vmatmul.f32.gmra.mxu0 %v748_v18  ;;  %842 = vmatmul.f32.gmra.mxu1 %v2385_v39  ;;  %v771_v41 = vsub.f32 %v769_v59, %v770_v63  ;;  %v777_v5 = vsub.f32 %v703_v57, %v776_v51 }
 0x102   : > { %v787_v28 = vsub.f32 %v785_v12, %v786_v15 }
 0x103   : > { %903 = vmatmul.f32.gmra.mxu2 %v753_v55  ;;  %v772_v53 = vand.u32 4294901760, %v771_v41  ;;  %v778_v26 = vand.u32 4294901760, %v777_v5 }
 0x104   : > { %v788_v11 = vand.u32 4294901760, %v787_v28 }
 0x105   : > { %968 = vmatmul.f32.gmra.mxu3 %v754_v23  ;;  %v779_v25 = vsub.f32 %v777_v5, %v778_v26 }
 0x107   : > { %v780_v50 = vand.u32 4294901760, %v779_v25 }
 0x109   : > { %757 = vmatmul.f32.gmra.mxu0 %v756_v14  ;;  %846 = vmatmul.f32.gmra.mxu1 %v760_v62 }
 0x10b   : > { %908 = vmatmul.f32.gmra.mxu2 %v761_v47 }
 0x10d   : > { %974 = vmatmul.f32.gmra.mxu3 %v762_v21 }
 0x111   : > { %765 = vmatmul.f32.gmra.mxu0 %v764_v24  ;;  %850 = vmatmul.f32.gmra.mxu1 %v768_v38 }
 0x113   : > { %913 = vmatmul.f32.gmra.mxu2 %v769_v59 }
 0x115   : > { %980 = vmatmul.f32.gmra.mxu3 %v770_v63 }
 0x119   : > { %773 = vmatmul.f32.gmra.mxu0 %v772_v53  ;;  %854 = vmatmul.f32.gmra.mxu1 %v776_v51 }
 0x11b   : > { %918 = vmatmul.f32.gmra.mxu2 %v777_v5 }
 0x11d   : > { %986 = vmatmul.f32.gmra.mxu3 %v778_v26 }
 0x121   : > { %781 = vmatmul.f32.gmra.mxu0 %v780_v50  ;;  %858 = vmatmul.f32.gmra.mxu1 %v784_v19 }
 0x123   : > { %923 = vmatmul.f32.gmra.mxu2 %v785_v12 }
 0x125   : > { %992 = vmatmul.f32.gmra.mxu3 %v786_v15 }
 0x129   : > { %789 = vmatmul.f32.gmra.mxu0 %v788_v11  ;;  %1078 = vmatmul.f32.vlgmr.msrb.gmra.mxu1 %v2148_v42 }
 0x131   : > { %1025 = vmatmul.f32.vlgmr.msrb.gmra.mxu0 %v2148_v42  ;;  %1082 = vmatmul.f32.gmra.mxu1 %v2203_v36 }
 0x139   : > { %1029 = vmatmul.f32.gmra.mxu0 %v2203_v36  ;;  %1086 = vmatmul.f32.gmra.mxu1 %v2383_v46 }
 0x141   : > { %1033 = vmatmul.f32.gmra.mxu0 %v2383_v46  ;;  %1090 = vmatmul.f32.gmra.mxu1 %v2385_v39 }
 0x143   : > { %v831_v42 = vpop.f32.mrf.mxu1 }
 0x149   : > { %1037 = vmatmul.f32.gmra.mxu0 %v2385_v39  ;;  %1094 = vmatmul.f32.gmra.mxu1 %v760_v62 }
 0x14d   : > { %v734_v17 = vpop.f32.mrf.mxu0 }
 0x14e   : > { %v889_v39 = vpop.f32.mrf.mxu2  ;;  %v832_v10 = vadd.f32 %v831_v42, %v734_v17 }
 0x14f   : > { %v951_v61 = vpop.f32.mrf.mxu3 }
 0x150   : > { %v890_v30 = vadd.f32 %v889_v39, %v832_v10 }
 0x151   : > { %1041 = vmatmul.f32.gmra.mxu0 %v760_v62  ;;  %1098 = vmatmul.f32.gmra.mxu1 %v768_v38  ;;  %v835_v7 = vpop.f32.mrf.mxu1 }
 0x152   : > { %v952_v55 = vadd.f32 %v951_v61, %v890_v30 }
 0x159   : > { %1045 = vmatmul.f32.gmra.mxu0 %v768_v38  ;;  %1102 = vmatmul.f32.gmra.mxu1 %v776_v51  ;;  %v894_v16 = vpop.f32.mrf.mxu2 }
 0x15b   : > { %v957_v29 = vpop.f32.mrf.mxu3 }
 0x15c   : > { %v742_v36 = vpop.f32.mrf.mxu0 }
 0x15d   : > { %v836_v58 = vadd.f32 %v835_v7, %v742_v36 }
 0x15f   : > { %v895_v18 = vadd.f32 %v894_v16, %v836_v58 }
 0x161   : > { %1049 = vmatmul.f32.gmra.mxu0 %v776_v51  ;;  %1106 = vmatmul.f32.gmra.mxu1 %v784_v19  ;;  %v958_v40 = vadd.f32 %v957_v29, %v895_v18 }
 0x169   : > { %1053 = vmatmul.f32.gmra.mxu0 %v784_v19 }
 0x176   : > { %v839_v60 = vpop.f32.mrf.mxu1 }
 0x17e   : > { %v750_v56 = vpop.f32.mrf.mxu0  ;;  %v843_v4 = vpop.f32.mrf.mxu1 }
 0x17f   : > { %v899_v34 = vpop.f32.mrf.mxu2  ;;  %v840_v44 = vadd.f32 %v839_v60, %v750_v56 }
 0x180   : > { %v963_v62 = vpop.f32.mrf.mxu3 }
 0x181   : > { %v900_v31 = vadd.f32 %v899_v34, %v840_v44 }
 0x183   : > { %v964_v38 = vadd.f32 %v963_v62, %v900_v31 }
 0x186   : > { %v758_v2 = vpop.f32.mrf.mxu0  ;;  %v847_v20 = vpop.f32.mrf.mxu1 }
 0x187   : > { %v904_v52 = vpop.f32.mrf.mxu2  ;;  %v844_v32 = vadd.f32 %v843_v4, %v758_v2 }
 0x188   : > { %v969_v21 = vpop.f32.mrf.mxu3 }
 0x189   : > { %v905_v57 = vadd.f32 %v904_v52, %v844_v32 }
 0x18b   : > { %v970_v51 = vadd.f32 %v969_v21, %v905_v57 }
 0x18e   : > { %v766_v33 = vpop.f32.mrf.mxu0  ;;  %v851_v48 = vpop.f32.mrf.mxu1 }
 0x18f   : > { %v909_v63 = vpop.f32.mrf.mxu2  ;;  %v848_v8 = vadd.f32 %v847_v20, %v766_v33 }
 0x190   : > { %v975_v9 = vpop.f32.mrf.mxu3 }
 0x191   : > { %v910_v54 = vadd.f32 %v909_v63, %v848_v8 }
 0x193   : > { %v976_v25 = vadd.f32 %v975_v9, %v910_v54 }
 0x196   : > { %v774_v22 = vpop.f32.mrf.mxu0  ;;  %v855_v46 = vpop.f32.mrf.mxu1 }
 0x197   : > { %v914_v19 = vpop.f32.mrf.mxu2  ;;  %v852_v12 = vadd.f32 %v851_v48, %v774_v22 }
 0x198   : > { %v981_v28 = vpop.f32.mrf.mxu3 }
 0x199   : > { %v915_v11 = vadd.f32 %v914_v19, %v852_v12 }
 0x19b   : > { %v982_v7 = vadd.f32 %v981_v28, %v915_v11 }
 0x19e   : > { %v782_v1 = vpop.f32.mrf.mxu0  ;;  %v2422_v27 = vpop.f32.mrf.mxu1 }
 0x19f   : > { %v856_v36 = vadd.f32 %v855_v46, %v782_v1  ;;  %v919_v60 = vpop.f32.mrf.mxu2 }
 0x1a0   : > { %v987_v33 = vpop.f32.mrf.mxu3 }
 0x1a1   : > { %v920_v2 = vadd.f32 %v919_v60, %v856_v36  ;;  %v1729_v36 = vmov 0.0  }
 0x1a3   : > { %v988_v48 = vadd.f32 %v987_v33, %v920_v2 }
 0x1a6   : > { %v2424_v43 = vpop.f32.mrf.mxu0  ;;  %v1079_v0 = vpop.f32.mrf.mxu1 }
 0x1a7   : > { %v860_v22 = vadd.f32 %v2422_v27, %v2424_v43  ;;  %v924_v10 = vpop.f32.mrf.mxu2 }
 0x1a8   : > { %v993_v46 = vpop.f32.mrf.mxu3 }
 0x1ae   : > { %v1026_v3 = vpop.f32.mrf.mxu0  ;;  %v1083_v37 = vpop.f32.mrf.mxu1 }
 0x1af   : > { %v1027_v35 = vadd.f32 %v1026_v3, %v952_v55 }
 0x1b1   : > { %v2433_v23 = vadd.f32 %v1079_v0, %v1027_v35  ;;  %v925_v0 = vadd.f32 %v924_v10, %v860_v22 }
 0x1b3   : > { %1110 = vst [vmem:[%s2431_s26] sm:$0xff] %v2433_v23  ;;  %v994_v1 = vadd.f32 %v993_v46, %v925_v0 }
 0x1b6   : > { %v1030_v45 = vpop.f32.mrf.mxu0  ;;  %v1087_v49 = vpop.f32.mrf.mxu1 }
 0x1b7   : > { %v1031_v47 = vadd.f32 %v1030_v45, %v958_v40  ;;  %v1131_v45 = vlaneseq }
 0x1b9   : > { %v2437_v14 = vadd.f32 %v1083_v37, %v1031_v47  ;;  %v1132_v52 = vshrl.u32 %v1131_v45, 7 }
 0x1bb   : > { %1111 = vst [vmem:[%s2431_s26 + $0x8] sm:$0xff] %v2437_v14  ;;  %v1134_v32 = vadd.s32 16, %v1132_v52  ;;  %v2469_v57 = vadd.s32 48, %v1132_v52  ;;  %v2471_v63 = vadd.s32 56, %v1132_v52 }
 0x1be   : > { %v1034_v13 = vpop.f32.mrf.mxu0  ;;  %v1091_v59 = vpop.f32.mrf.mxu1 }
 0x1bf   : > { %v1035_v6 = vadd.f32 %v1034_v13, %v964_v38  ;;  %v1133_v38 = vadd.s32 8, %v1132_v52  ;;  %v1135_v13 = vadd.s32 24, %v1132_v52 }
 0x1c1   : > { %v2441_v24 = vadd.f32 %v1087_v49, %v1035_v6  ;;  %v1136_v6 = vadd.s32 32, %v1132_v52 }
 0x1c3   : > { %1112 = vst [vmem:[%s2431_s26 + $0x10] sm:$0xff] %v2441_v24 }
 0x1c6   : > { %v1038_v41 = vpop.f32.mrf.mxu0  ;;  %v1095_v26 = vpop.f32.mrf.mxu1 }
 0x1c7   : > { %v1039_v5 = vadd.f32 %v1038_v41, %v970_v51 }
 0x1c9   : > { %v2445_v53 = vadd.f32 %v1091_v59, %v1039_v5  ;;  %v2467_v59 = vadd.s32 40, %v1132_v52 }
 0x1cb   : > { %1113 = vst [vmem:[%s2431_s26 + $0x18] sm:$0xff] %v2445_v53 }
 0x1ce   : > { %v1042_v50 = vpop.f32.mrf.mxu0  ;;  %v1099_v17 = vpop.f32.mrf.mxu1 }
 0x1cf   : > { %v1043_v15 = vadd.f32 %v1042_v50, %v976_v25 }
 0x1d1   : > { %v2449_v42 = vadd.f32 %v1095_v26, %v1043_v15 }
 0x1d3   : > { %1114 = vst [vmem:[%s2431_s26 + $0x20] sm:$0xff] %v2449_v42  ;;  %v1118_v27 = vmax.f32 %v2433_v23, %v2449_v42 }
 0x1d6   : > { %v1046_v56 = vpop.f32.mrf.mxu0  ;;  %v1103_v39 = vpop.f32.mrf.mxu1 }
 0x1d7   : > { %v1047_v4 = vadd.f32 %v1046_v56, %v982_v7 }
 0x1d9   : > { %v1100_v20 = vadd.f32 %v1099_v17, %v1047_v4 }
 0x1db   : > { %1115 = vst [vmem:[%s2431_s26 + $0x28] sm:$0xff] %v1100_v20  ;;  %v1119_v34 = vmax.f32 %v2437_v14, %v1100_v20 }
 0x1dd   : > { %v1122_v35 = vmax.f32 %v1118_v27, %v1119_v34 }
 0x1de   : > { %v1050_v61 = vpop.f32.mrf.mxu0  ;;  %v1107_v58 = vpop.f32.mrf.mxu1 }
 0x1df   : > { %v1051_v16 = vadd.f32 %v1050_v61, %v988_v48 }
 0x1e1   : > { %v1104_v29 = vadd.f32 %v1103_v39, %v1051_v16 }
 0x1e3   : > { %1116 = vst [vmem:[%s2431_s26 + $0x30] sm:$0xff] %v1104_v29  ;;  %v1120_v43 = vmax.f32 %v2441_v24, %v1104_v29 }
 0x1e6   : > { %v1054_v30 = vpop.f32.mrf.mxu0 }
 0x1e7   : > { %v1055_v55 = vadd.f32 %v1054_v30, %v994_v1 }
 0x1e9   : > { %v1108_v3 = vadd.f32 %v1107_v58, %v1055_v55 }
 0x1eb   : > { %1117 = vst [vmem:[%s2431_s26 + $0x38] sm:$0xff] %v1108_v3  ;;  %v1121_v37 = vmax.f32 %v2445_v53, %v1108_v3 }
 0x1ed   : > { %v1123_v18 = vmax.f32 %v1120_v43, %v1121_v37 }
 0x1ef   : > { %v1124_v62 = vmax.f32 %v1122_v35, %v1123_v18 }
 0x1f1   : > { %v1125_v40 = vrot.slane %v1124_v62, 4 }
 0x1f3   : > { %v1126_v44 = vmax.f32 %v1124_v62, %v1125_v40 }
 0x1f5   : > { %v1127_v49 = vrot.slane %v1126_v44, 2 }
 0x1f7   : > { %v1128_v47 = vmax.f32 %v1126_v44, %v1127_v49 }
 0x1f9   : > { %v1129_v31 = vrot.slane %v1128_v47, 1 }
 0x1fb   : > { %v1130_v21 = vmax.f32 %v1128_v47, %v1129_v31 }
 0x1fd   : > { %vm1140_vm6 = vcmp.eq.f32.partialorder %v2433_v23, %v1130_v21  ;;  %vm1141_vm7 = vcmp.eq.f32.partialorder %v2437_v14, %v1130_v21  ;;  %vm1142_vm9 = vcmp.eq.f32.partialorder %v2441_v24, %v1130_v21  ;;  %vm1143_vm8 = vcmp.eq.f32.partialorder %v2445_v53, %v1130_v21  ;;  %1179 = vst [vmem:[%s249_s8] sm:$0x1] %v1130_v21 }
 0x1fe   : > { %vm1144_vm10 = vcmp.eq.f32.partialorder %v2449_v42, %v1130_v21  ;;  %vm1145_vm11 = vcmp.eq.f32.partialorder %v1100_v20, %v1130_v21  ;;  %vm1146_vm12 = vcmp.eq.f32.partialorder %v1104_v29, %v1130_v21  ;;  %vm1147_vm13 = vcmp.eq.f32.partialorder %v1108_v3, %v1130_v21 }
 0x1ff   : > { %v1148_v51 = vsel %vm1140_vm6, %v1132_v52, 64  ;;  %v1149_v8 = vsel %vm1141_vm7, %v1133_v38, 64  ;;  %v1150_v9 = vsel %vm1142_vm9, %v1134_v32, 64  ;;  %v1151_v41 = vsel %vm1143_vm8, %v1135_v13, 64 }
 0x200   : > { %v1152_v5 = vsel %vm1144_vm10, %v1136_v6, 64  ;;  %v1153_v54 = vsel %vm1145_vm11, %v2467_v59, 64  ;;  %v1154_v23 = vsel %vm1146_vm12, %v2469_v57, 64  ;;  %v1155_v14 = vsel %vm1147_vm13, %v2471_v63, 64 }
 0x201   : > { %vm1156_vm14 = vcmp.lt.s32.totalorder %v1148_v51, %v1152_v5  ;;  %vm1158_vm15 = vcmp.lt.s32.totalorder %v1149_v8, %v1153_v54  ;;  %vm1160_vm1 = vcmp.lt.s32.totalorder %v1150_v9, %v1154_v23  ;;  %vm1162_vm2 = vcmp.lt.s32.totalorder %v1151_v41, %v1155_v14 }
 0x202   : > { %v1157_v24 = vsel %vm1156_vm14, %v1148_v51, %v1152_v5  ;;  %v1159_v53 = vsel %vm1158_vm15, %v1149_v8, %v1153_v54  ;;  %v1161_v26 = vsel %vm1160_vm1, %v1150_v9, %v1154_v23  ;;  %v1163_v19 = vsel %vm1162_vm2, %v1151_v41, %v1155_v14 }
 0x203   : > { %vm1164_vm3 = vcmp.lt.s32.totalorder %v1157_v24, %v1159_v53  ;;  %vm1166_vm4 = vcmp.lt.s32.totalorder %v1161_v26, %v1163_v19  ;;  %vm1237_vm2 = vcmask 523264  }
 0x204   : > { %v1165_v25 = vsel %vm1164_vm3, %v1157_v24, %v1159_v53  ;;  %v1167_v12 = vsel %vm1166_vm4, %v1161_v26, %v1163_v19 }
 0x205   : > { %vm1168_vm5 = vcmp.lt.s32.totalorder %v1165_v25, %v1167_v12 }
 0x206   : > { %v1169_v50 = vsel %vm1168_vm5, %v1165_v25, %v1167_v12 }
 0x207   : > { %v1170_v15 = vrot.slane %v1169_v50, 4 }
 0x209   : > { %vm1171_vm6 = vcmp.lt.s32.totalorder %v1169_v50, %v1170_v15 }
 0x20a   : > { %v1172_v28 = vsel %vm1171_vm6, %v1169_v50, %v1170_v15 }
 0x20b   : > { %v1173_v11 = vrot.slane %v1172_v28, 2 }
 0x20d   : > { %vm1174_vm7 = vcmp.lt.s32.totalorder %v1172_v28, %v1173_v11 }
 0x20e   : > { %v1175_v42 = vsel %vm1174_vm7, %v1172_v28, %v1173_v11 }
 0x20f   : > { %v1176_v17 = vrot.slane %v1175_v42, 1 }
 0x211   : > { %vm1177_vm9 = vcmp.lt.s32.totalorder %v1175_v42, %v1176_v17 }
 0x212   : > { %v1178_v7 = vsel %vm1177_vm9, %v1175_v42, %v1176_v17 }
 0x213   : > { %vm1181_vm8 = vcmp.eq.s32.totalorder %v1132_v52, %v1178_v7  ;;  %1180 = vst [vmem:[%s2484_s10] sm:$0x1] %v1178_v7  ;;  %vm1182_vm10 = vcmp.eq.s32.totalorder %v1133_v38, %v1178_v7  ;;  %vm1183_vm11 = vcmp.eq.s32.totalorder %v1134_v32, %v1178_v7  ;;  %vm1184_vm12 = vcmp.eq.s32.totalorder %v1135_v13, %v1178_v7 }
 0x214   : > { %v1536_v60 = vsel %vm1181_vm8, 1.0, %v1729_v36  ;;  %v1537_v56 = vsel %vm1182_vm10, 1.0, %v1729_v36  ;;  %v1538_v4 = vsel %vm1183_vm11, 1.0, %v1729_v36  ;;  %v1539_v2 = vsel %vm1184_vm12, 1.0, %v1729_v36 }
 0x215   : > { %1205 = vxpose.xlu2.b32.start [1/8] (short) %v1536_v60, 128  ;;  %vm1185_vm13 = vcmp.eq.s32.totalorder %v1136_v6, %v1178_v7  ;;  %vm1186_vm14 = vcmp.eq.s32.totalorder %v2467_v59, %v1178_v7  ;;  %vm1187_vm15 = vcmp.eq.s32.totalorder %v2469_v57, %v1178_v7  ;;  %vm1188_vm1 = vcmp.eq.s32.totalorder %v2471_v63, %v1178_v7 }
 0x216   : > { %v1540_v20 = vsel %vm1185_vm13, 1.0, %v1729_v36  ;;  %v1541_v33 = vsel %vm1186_vm14, 1.0, %v1729_v36  ;;  %v1542_v48 = vsel %vm1187_vm15, 1.0, %v1729_v36  ;;  %v1543_v22 = vsel %vm1188_vm1, 1.0, %v1729_v36 }
 0x21d   : > { %1206 = vxpose.xlu2.b32.cont [2/8] (short) %v1537_v56, 128 }
 0x225   : > { %1207 = vxpose.xlu2.b32.cont [3/8] (short) %v1538_v4, 128 }
 0x22d   : > { %1208 = vxpose.xlu2.b32.cont [4/8] (short) %v1539_v2, 128 }
 0x235   : > { %1209 = vxpose.xlu2.b32.cont [5/8] (short) %v1540_v20, 128 }
 0x23d   : > { %1210 = vxpose.xlu2.b32.cont [6/8] (short) %v1541_v33, 128 }
 0x245   : > { %1211 = vxpose.xlu2.b32.cont [7/8] (short) %v1542_v48, 128 }
 0x24d   : > { %1212 = vxpose.xlu2.b32.end [8/8] (short) %v1543_v22, 128 }
 0x2ae   : > { %v1221_v39 = vpop.trf.xlu2 }
 0x2af   : > { %1544 = vmatmul.msk.f32.vlgmr.msrb.gmra.mxu2 %vm1237_vm2, %v1221_v39 }
 0x2b6   : > { %v1222_v61 = vpop.trf.xlu2 }
 0x2b7   : > { %1545 = vmatmul.msk.f32.gmra.mxu2 %vm1237_vm2, %v1222_v61 }
 0x2be   : > { %v1223_v16 = vpop.trf.xlu2 }
 0x2bf   : > { %1546 = vmatmul.msk.f32.gmra.mxu2 %vm1237_vm2, %v1223_v16 }
 0x2c6   : > { %v1224_v10 = vpop.trf.xlu2 }
 0x2c7   : > { %1547 = vmatmul.msk.f32.gmra.mxu2 %vm1237_vm2, %v1224_v10 }
 0x2ce   : > { %v1225_v0 = vpop.trf.xlu2 }
 0x2cf   : > { %1548 = vmatmul.msk.f32.gmra.mxu2 %vm1237_vm2, %v1225_v0 }
 0x2d6   : > { %v1226_v29 = vpop.trf.xlu2 }
 0x2d7   : > { %1549 = vmatmul.msk.f32.gmra.mxu2 %vm1237_vm2, %v1226_v29 }
 0x2de   : > { %v1227_v46 = vpop.trf.xlu2 }
 0x2df   : > { %1550 = vmatmul.msk.f32.gmra.mxu2 %vm1237_vm2, %v1227_v46 }
 0x2e6   : > { %v1228_v1 = vpop.trf.xlu2 }
 0x2e7   : > { %1551 = vmatmul.msk.f32.gmra.mxu2 %vm1237_vm2, %v1228_v1 }
 0x2ee   : > { %v1229_v30 = vpop.trf.xlu2 }
 0x2ef   : > { %1552 = vmatmul.msk.f32.vlgmr.msrb.gmra.mxu3 %vm1237_vm2, %v1229_v30 }
 0x2f6   : > { %v1230_v55 = vpop.trf.xlu2 }
 0x2f7   : > { %1553 = vmatmul.msk.f32.gmra.mxu3 %vm1237_vm2, %v1230_v55 }
 0x2fe   : > { %v1231_v58 = vpop.trf.xlu2 }
 0x2ff   : > { %1554 = vmatmul.msk.f32.gmra.mxu3 %vm1237_vm2, %v1231_v58 }
 0x306   : > { %v1232_v34 = vpop.trf.xlu2 }
 0x307   : > { %1555 = vmatmul.msk.f32.gmra.mxu3 %vm1237_vm2, %v1232_v34 }
 0x30e   : > { %v1233_v3 = vpop.trf.xlu2 }
 0x30f   : > { %1556 = vmatmul.msk.f32.gmra.mxu3 %vm1237_vm2, %v1233_v3 }
 0x316   : > { %v1234_v27 = vpop.trf.xlu2 }
 0x317   : > { %1557 = vmatmul.msk.f32.gmra.mxu3 %vm1237_vm2, %v1234_v27 }
 0x31e   : > { %v1235_v43 = vpop.trf.xlu2 }
 0x31f   : > { %1558 = vmatmul.msk.f32.gmra.mxu3 %vm1237_vm2, %v1235_v43 }
 0x326   : > { %v1236_v37 = vpop.trf.xlu2 }
 0x327   : > { %1559 = vmatmul.msk.f32.gmra.mxu3 %vm1237_vm2, %v1236_v37 }
 0x328   : > { %1692 = shalt.err (!%p1689_p3)
}
 0x329   : > { %1573 = dma.vmem_to_hbm [thread:$0]  (%p1798_p5), %s1398_s15, 16, %s1400_s16, %s1376_s17  }
 0x32a   : > { %s2527_s10 = scalar_lea.vmem %s2583_s5, %s1564_s11 }
 0x332   : > { %v1303_v35 = vpop.f32.mrf.mxu2 }
 0x333   : > { %1351 = vst.msk [vmem:[%s2527_s10] sm:$0xff] %vm271_vm0, %v1303_v35 }
 0x33a   : > { %v1306_v18 = vpop.f32.mrf.mxu2 }
 0x33b   : > { %1352 = vst.msk [vmem:[%s2527_s10 + $0x8] sm:$0xff] %vm271_vm0, %v1306_v18 }
 0x342   : > { %v1309_v62 = vpop.f32.mrf.mxu2 }
 0x343   : > { %1353 = vst.msk [vmem:[%s2527_s10 + $0x10] sm:$0xff] %vm271_vm0, %v1309_v62 }
 0x34a   : > { %v1312_v40 = vpop.f32.mrf.mxu2 }
 0x34b   : > { %1354 = vst.msk [vmem:[%s2527_s10 + $0x18] sm:$0xff] %vm271_vm0, %v1312_v40 }
 0x352   : > { %v1315_v44 = vpop.f32.mrf.mxu2 }
 0x353   : > { %1355 = vst.msk [vmem:[%s2527_s10 + $0x20] sm:$0xff] %vm271_vm0, %v1315_v44 }
 0x35a   : > { %v1318_v45 = vpop.f32.mrf.mxu2 }
 0x35b   : > { %1356 = vst.msk [vmem:[%s2527_s10 + $0x28] sm:$0xff] %vm271_vm0, %v1318_v45 }
 0x362   : > { %v1321_v49 = vpop.f32.mrf.mxu2 }
 0x363   : > { %1357 = vst.msk [vmem:[%s2527_s10 + $0x30] sm:$0xff] %vm271_vm0, %v1321_v49 }
 0x36a   : > { %v1324_v47 = vpop.f32.mrf.mxu2 }
 0x36b   : > { %1358 = vst.msk [vmem:[%s2527_s10 + $0x38] sm:$0xff] %vm271_vm0, %v1324_v47 }
 0x372   : > { %v1327_v52 = vpop.f32.mrf.mxu3 }
 0x373   : > { %1359 = vst.msk [vmem:[%s2527_s10 + $0x40] sm:$0xff] %vm271_vm0, %v1327_v52 }
 0x37a   : > { %v1330_v31 = vpop.f32.mrf.mxu3 }
 0x37b   : > { %1360 = vst.msk [vmem:[%s2527_s10 + $0x48] sm:$0xff] %vm271_vm0, %v1330_v31 }
 0x382   : > { %v1333_v21 = vpop.f32.mrf.mxu3 }
 0x383   : > { %1361 = vst.msk [vmem:[%s2527_s10 + $0x50] sm:$0xff] %vm271_vm0, %v1333_v21 }
 0x38a   : > { %v1336_v38 = vpop.f32.mrf.mxu3 }
 0x38b   : > { %1362 = vst.msk [vmem:[%s2527_s10 + $0x58] sm:$0xff] %vm271_vm0, %v1336_v38 }
 0x392   : > { %v1339_v32 = vpop.f32.mrf.mxu3 }
 0x393   : > { %1363 = vst.msk [vmem:[%s2527_s10 + $0x60] sm:$0xff] %vm271_vm0, %v1339_v32 }
 0x39a   : > { %v1342_v13 = vpop.f32.mrf.mxu3 }
 0x39b   : > { %1364 = vst.msk [vmem:[%s2527_s10 + $0x68] sm:$0xff] %vm271_vm0, %v1342_v13 }
 0x3a2   : > { %v1345_v6 = vpop.f32.mrf.mxu3 }
 0x3a3   : > { %1365 = vst.msk [vmem:[%s2527_s10 + $0x70] sm:$0xff] %vm271_vm0, %v1345_v6 }
 0x3aa   : > { %v1348_v59 = vpop.f32.mrf.mxu3 }
 0x3ab   : > { %1366 = vst.msk [vmem:[%s2527_s10 + $0x78] sm:$0xff] %vm271_vm0, %v1348_v59 }
 0x3ac PF: > { %p1579_p4 = scmp.ge.s32.totalorder %s1727_s21, 2  ;;  %s1428_s28 = sand.u32 1, %s1715_s18  }
 0x3ad   : > { %s1429_s11 = scalar_lea.sflag [#allocation3], %s1428_s28 }
 0x3ae   : > { %p1576_p5 = pnand %p1579_p4, %p1802_p6 }
 0x3b0   : > { %p1577_p7 = pneg %p1576_p5 }
 0x3b2   : > { %1710 = dma.done.wait (%p1577_p7), %s1429_s11, 16  }
 0x3b3   : > { %1712 = vsyncadd (%p1577_p7), %s1429_s11, 4294967280  ;;  %p16_p8 = scmp.ge.s32.totalorder %s1785_s24, 4   ;;  %s2614_s18 = smov %s1719_s19 }
 0x3b4   : > { %s2615_s19 = smov %s1723_s20  ;;  %s2616_s20 = smov %s1796_s27 }
 0x3b5   : > { %s2617_s21 = smov %s1785_s24  ;;  %18 = sbr.rel (!%p16_p8) target bundleno = 3 (0x3), region = 99 }
 0x3ba   :  { %1442 = vsyncpa [#allocation3], 1 }
 0x3bb   :  { %1444 = vsyncpa [#allocation3 + $0x1], 1 }

</bundles_post_ra>
